<compile_context>
chip_gen: v5e
topology: v5e:2x2
jax: 0.10.0
libtpu: 0.0.40
codegen_flags: <defaults>
</compile_context>

<pallas_src>
import functools
import math

import jax
import jax.numpy as jnp
from jax import lax
from jax.experimental import pallas as pl
from jax.experimental.pallas import tpu as pltpu


# ----------------------------------------------------------------------------
# fused kernel: grid=(batch_blocks, layers); tokens stay resident in VMEM
# across layers for each batch block
# ----------------------------------------------------------------------------
def _vit_layers_kernel(
    x0_ref,                                  # (bB, Sp, E)        f32
    ln1_g_ref, ln1_b_ref,                    # (1, 1, E)          f32
    wqkv_ref, bqkv_ref,                      # (1, E, 3E) bf16 / (1, 1, 3E) f32
    wo_ref, bo_ref,                          # (1, E, E)  bf16 / (1, 1, E)  f32
    ln2_g_ref, ln2_b_ref,                    # (1, 1, E)          f32
    w1_ref, b1_ref,                          # (1, E, M)  bf16 / (1, 1, M)  f32
    w2_ref, b2_ref,                          # (1, M, E)  bf16 / (1, 1, E)  f32
    cw1_ref, cb1_ref,                        # (E, E2)    bf16 / (1, E2)    f32
    cw2_ref, cb2_ref,                        # (E2, CP)   bf16 / (1, CP)    f32
    tok_ref,                                 # OUT (bB, Sp, E)    f32 (VMEM resident)
    logits_ref,                              # OUT (bB, 1, CP)    f32
    ctx_ref,                                 # scratch (bB, Sp, E) f32
    *, heads, valid_len, eps=1e-5,
):
    l = pl.program_id(1)
    n_layers = pl.num_programs(1)
    bf16 = jnp.bfloat16
    f32 = jnp.float32

    # Load the initial token tensor into the resident output block once.
    @pl.when(l == 0)
    def _():
        tok_ref[...] = x0_ref[...]

    x3 = tok_ref[...]                        # (bB, Sp, E) f32, carried across layers
    bB, Sp, E = x3.shape
    N = bB * Sp
    d = E // heads
    x = x3.reshape(N, E)                     # batch folded into rows for projections

    def layernorm(v, g, b):                  # f32 math, biased variance (PyTorch)
        mu = jnp.mean(v, axis=-1, keepdims=True)
        var = jnp.mean((v - mu) ** 2, axis=-1, keepdims=True)
        return (v - mu) * lax.rsqrt(var + eps) * g + b

    # ---- attention branch ---------------------------------------------------
    xn = layernorm(x, ln1_g_ref[0], ln1_b_ref[0])
    # one (N, E) x (E, 3E) matmul; 1/sqrt(d) already folded into the Q columns
    qkv = jnp.dot(xn.astype(bf16), wqkv_ref[0],
                  preferred_element_type=f32) + bqkv_ref[0]       # (N, 3E) f32
    qkv = qkv.reshape(bB, Sp, 3 * E)

    if Sp > valid_len:                       # static branch: key padding mask
        kvalid = lax.broadcasted_iota(jnp.int32, (1, 1, Sp), 2) < valid_len

    for h in range(heads):                   # heads is small -> static unroll
        q = qkv[:, :, h * d:(h + 1) * d].astype(bf16)
        k = qkv[:, :, E + h * d:E + (h + 1) * d].astype(bf16)
        v = qkv[:, :, 2 * E + h * d:2 * E + (h + 1) * d].astype(bf16)
        s = jnp.einsum('bqd,bkd->bqk', q, k, preferred_element_type=f32)
        if Sp > valid_len:
            s = jnp.where(kvalid, s, -1e30)  # padded keys get ~zero weight
        s = s - jnp.max(s, axis=-1, keepdims=True)
        p = jnp.exp(s)
        p = p * pl.reciprocal(jnp.sum(p, axis=-1, keepdims=True), approx=True)
        ctx = jnp.einsum('bqk,bkd->bqd', p.astype(bf16), v,
                         preferred_element_type=f32)
        # write this head's context into its column block of the scratch
        ctx_ref[:, :, h * d:(h + 1) * d] = ctx

    # single full-E contraction for the output projection
    attn = jnp.dot(ctx_ref[...].reshape(N, E).astype(bf16), wo_ref[0],
                   preferred_element_type=f32)
    x = x + attn + bo_ref[0]                 # residual 1

    # ---- feed-forward branch ------------------------------------------------
    xn2 = layernorm(x, ln2_g_ref[0], ln2_b_ref[0])
    h1 = jnp.dot(xn2.astype(bf16), w1_ref[0],
                 preferred_element_type=f32) + b1_ref[0]          # (N, M) f32
    h1 = jnp.maximum(h1, 0.0).astype(bf16)   # ReLU, then bf16 for the next matmul
    ff = jnp.dot(h1, w2_ref[0], preferred_element_type=f32) + b2_ref[0]
    new_x = x + ff                           # residual 2
    new3 = new_x.reshape(bB, Sp, E)
    tok_ref[...] = new3                      # write carried state back

    # ---- classification head fused into the last layer step -----------------
    @pl.when(l == n_layers - 1)
    def _():
        cls = new3[:, 0, :]                  # (bB, E) cls token
        hh = jnp.dot(cls.astype(bf16), cw1_ref[...],
                     preferred_element_type=f32) + cb1_ref[...]
        hh = 0.5 * hh * (1.0 + lax.erf(hh * (1.0 / math.sqrt(2.0))))  # exact GELU
        lo = jnp.dot(hh.astype(bf16), cw2_ref[...],
                     preferred_element_type=f32) + cb2_ref[...]
        logits_ref[...] = lo.reshape(lo.shape[0], 1, lo.shape[1])   # lane-dense CP


# ----------------------------------------------------------------------------
# pallas_call wrapper
# ----------------------------------------------------------------------------
def _nbytes(a):
    return int(a.size) * a.dtype.itemsize


def _vit_fused_call(tok0, blocks, head_p, *, heads, layers, valid_len,
                    batch_block=None):
    B, Sp, E = tok0.shape
    CP = head_p['w2'].shape[1]
    bB = B if batch_block is None else batch_block
    assert B % bB == 0
    nB = B // bB

    kernel = functools.partial(_vit_layers_kernel, heads=heads, valid_len=valid_len)

    layer_arrays = (
        blocks['ln1_g'], blocks['ln1_b'],
        blocks['wqkv'], blocks['bqkv'],
        blocks['wo'], blocks['bo'],
        blocks['ln2_g'], blocks['ln2_b'],
        blocks['w1'], blocks['b1'],
        blocks['w2'], blocks['b2'],
    )
    head_arrays = (head_p['w1'], head_p['b1'], head_p['w2'], head_p['b2'])

    def layer_spec(a):
        rest = tuple(a.shape[1:])
        zeros = (0,) * len(rest)
        return pl.BlockSpec((1,) + rest, lambda b, l, _z=zeros: (l,) + _z)

    def const_spec(a):
        nd = a.ndim
        return pl.BlockSpec(a.shape, lambda b, l, _n=nd: (0,) * _n)

    in_specs = ([pl.BlockSpec((bB, Sp, E), lambda b, l: (b, 0, 0))]
                + [layer_spec(a) for a in layer_arrays]
                + [const_spec(a) for a in head_arrays])

    out_shape = (jax.ShapeDtypeStruct((B, Sp, E), jnp.float32),
                 jax.ShapeDtypeStruct((B, 1, CP), jnp.float32))
    out_specs = (pl.BlockSpec((bB, Sp, E), lambda b, l: (b, 0, 0)),
                 pl.BlockSpec((bB, 1, CP), lambda b, l: (b, 0, 0)))

    # VMEM budget derived from actual buffer sizes (not hard-coded).
    M = blocks['w1'].shape[-1]
    per_layer_blk = sum(_nbytes(a) // a.shape[0] for a in layer_arrays)
    const_blk = _nbytes(tok0) // nB + sum(_nbytes(a) for a in head_arrays)
    out_blk = bB * Sp * E * 4 + bB * CP * 4
    scratch_blk = bB * Sp * E * 4
    inter_blk = bB * Sp * (3 * E + M + 4 * E) * 4 + bB * Sp * Sp * 4
    est = 2 * per_layer_blk + 2 * const_blk + 2 * out_blk + scratch_blk + inter_blk
    vmem_limit = int(min(max(2 * est, 32 * 1024 * 1024), 100 * 1024 * 1024))

    tokens, logits_padded = pl.pallas_call(
        kernel,
        grid=(nB, layers),
        in_specs=in_specs,
        out_specs=out_specs,
        out_shape=out_shape,
        scratch_shapes=[pltpu.VMEM((bB, Sp, E), jnp.float32)],
        compiler_params=pltpu.CompilerParams(
            # batch blocks are independent (megacore-shardable on v7x);
            # the layer axis carries the resident token state -> sequential.
            dimension_semantics=("parallel", "arbitrary"),
            vmem_limit_bytes=vmem_limit),
    )(tok0, *layer_arrays, *head_arrays)
    return tokens, logits_padded


# ----------------------------------------------------------------------------
# full ViT forward
# ----------------------------------------------------------------------------
def vit_forward(x, params, *, patch_size, heads, layers, classes,
                batch_block=None):
    B, C, H, W = x.shape
    E = params['pos_embedding'].shape[-1]
    ps = patch_size
    Hp, Wp = H // ps, W // ps

    # Patch embedding: stride==kernel Conv2d == patch extraction + tiny matmul.
    # Left to XLA on purpose (a separate pallas_call here is pure overhead).
    patches = x.reshape(B, C, Hp, ps, Wp, ps).transpose(0, 2, 4, 1, 3, 5)
    patches = patches.reshape(B, Hp * Wp, C * ps * ps)
    w = params['conv_w'].reshape(E, C * ps * ps).T
    tok = jnp.einsum('bpk,ke->bpe', patches, w) + params['conv_b']

    cls = jnp.broadcast_to(params['cls_token'], (B, 1, E))
    tok0 = jnp.concatenate([cls, tok], axis=1)                   # (B, S, E)
    S = tok0.shape[1]
    tok0 = tok0 + params['pos_embedding'][:, :S, :]
    # dropout: identity (inference).

    # Pad sequence length to a multiple of 8 (sublane alignment); padded key
    # positions are masked to -inf in the kernel softmax.
    Sp = ((S + 7) // 8) * 8
    if Sp != S:
        tok0 = jnp.pad(tok0, ((0, 0), (0, Sp - S), (0, 0)))

    tokens_p, logits_padded = _vit_fused_call(
        tok0, params['blocks'], params['cls_head'], heads=heads, layers=layers,
        valid_len=S, batch_block=batch_block)
    logits = logits_padded[:, 0, :classes]                       # unpad lanes
    tokens = tokens_p[:, :S, :]                                  # drop padded rows
    return logits, tokens


# ----------------------------------------------------------------------------
# deterministic parameter initialization (kernel-friendly layout)
# ----------------------------------------------------------------------------
def init_params(key, *, inp_channels, patch_size, max_len, classes, layers,
                heads, embed_dim, mlp_dim):
    keys = iter(jax.random.split(key, 32))

    def rnd(shape, scale=0.02):
        return scale * jax.random.normal(next(keys), shape, jnp.float32)

    bf16 = jnp.bfloat16
    E, M = embed_dim, mlp_dim
    d = E // heads
    E2 = E // 2
    CP = ((classes + 127) // 128) * 128          # lane-dense padded classes
    qk_scale = 1.0 / math.sqrt(d)

    params = {
        'conv_w': rnd((E, inp_channels, patch_size, patch_size)),
        'conv_b': rnd((E,)),
        'cls_token': rnd((1, 1, E)),
        'pos_embedding': rnd((1, max_len, E)),
    }

    # Per-layer weights stacked on a leading L axis; matmul weights in bf16.
    # 1/sqrt(d) folded into the Q columns (weights and bias) in f32, offline.
    wqkv = rnd((layers, E, 3 * E))
    wqkv = wqkv.at[:, :, :E].multiply(qk_scale)
    bqkv = rnd((layers, 1, 3 * E))
    bqkv = bqkv.at[:, :, :E].multiply(qk_scale)

    params['blocks'] = {
        'ln1_g': jnp.ones((layers, 1, E), jnp.float32),
        'ln1_b': jnp.zeros((layers, 1, E), jnp.float32),
        'wqkv': wqkv.astype(bf16),                        # in_proj_weight.T
        'bqkv': bqkv,
        'wo': rnd((layers, E, E)).astype(bf16),           # out_proj.weight.T
        'bo': rnd((layers, 1, E)),
        'ln2_g': jnp.ones((layers, 1, E), jnp.float32),
        'ln2_b': jnp.zeros((layers, 1, E), jnp.float32),
        'w1': rnd((layers, E, M)).astype(bf16),
        'b1': rnd((layers, 1, M)),
        'w2': rnd((layers, M, E)).astype(bf16),
        'b2': rnd((layers, 1, E)),
    }

    w2_head = rnd((E2, classes))
    b2_head = rnd((1, classes))
    params['cls_head'] = {
        'w1': rnd((E, E2)).astype(bf16),
        'b1': rnd((1, E2)),
        # classifier output padded to 128 lanes; wrapper slices back to `classes`
        'w2': jnp.zeros((E2, CP), bf16).at[:, :classes].set(w2_head.astype(bf16)),
        'b2': jnp.zeros((1, CP), jnp.float32).at[:, :classes].set(b2_head),
    }
    return params


# ----------------------------------------------------------------------------
if __name__ == "__main__":
    # small ViT config
    B, C, H, W = 2, 4, 16, 16
    patch_size = 4
    num_patches = (H // patch_size) * (W // patch_size)   # 16
    max_len = num_patches + 1                             # 17
    embed_dim, mlp_dim = 32, 64
    heads, layers, classes = 4, 2, 10

    key = jax.random.PRNGKey(0)
    k_inp, k_par = jax.random.split(key)
    x = jax.random.normal(k_inp, (B, C, H, W), jnp.float32)
    params = init_params(k_par, inp_channels=C, patch_size=patch_size,
                         max_len=max_len, classes=classes, layers=layers,
                         heads=heads, embed_dim=embed_dim, mlp_dim=mlp_dim)

    # On v7x, pass batch_block=B//2 to shard the batch across both TensorCores.
    fwd = jax.jit(functools.partial(vit_forward, patch_size=patch_size,
                                    heads=heads, layers=layers, classes=classes))
    logits, tokens = fwd(x, params)
    logits = jax.block_until_ready(logits)
    tokens = jax.block_until_ready(tokens)

    assert logits.shape == (B, classes)
    assert tokens.shape == (B, max_len, embed_dim)
    assert bool(jnp.all(jnp.isfinite(logits))) and bool(jnp.all(jnp.isfinite(tokens)))
    print("KERNEL_OK")
</pallas_src>

<mosaic_0001>
module attributes {stable_mosaic.version = 11 : i64} {
  func.func @_vit_layers_kernel(%arg0: i32, %arg1: i32, %arg2: memref<2x24x32xf32, #tpu.memory_space<vmem>>, %arg3: memref<1x1x32xf32, #tpu.memory_space<vmem>>, %arg4: memref<1x1x32xf32, #tpu.memory_space<vmem>>, %arg5: memref<1x32x96xbf16, #tpu.memory_space<vmem>>, %arg6: memref<1x1x96xf32, #tpu.memory_space<vmem>>, %arg7: memref<1x32x32xbf16, #tpu.memory_space<vmem>>, %arg8: memref<1x1x32xf32, #tpu.memory_space<vmem>>, %arg9: memref<1x1x32xf32, #tpu.memory_space<vmem>>, %arg10: memref<1x1x32xf32, #tpu.memory_space<vmem>>, %arg11: memref<1x32x64xbf16, #tpu.memory_space<vmem>>, %arg12: memref<1x1x64xf32, #tpu.memory_space<vmem>>, %arg13: memref<1x64x32xbf16, #tpu.memory_space<vmem>>, %arg14: memref<1x1x32xf32, #tpu.memory_space<vmem>>, %arg15: memref<32x16xbf16, #tpu.memory_space<vmem>>, %arg16: memref<1x16xf32, #tpu.memory_space<vmem>>, %arg17: memref<16x128xbf16, #tpu.memory_space<vmem>>, %arg18: memref<1x128xf32, #tpu.memory_space<vmem>>, %arg19: memref<2x24x32xf32, #tpu.memory_space<vmem>>, %arg20: memref<2x1x128xf32, #tpu.memory_space<vmem>>, %arg21: memref<2x24x32xf32, #tpu.memory_space<vmem>>) attributes {dimension_semantics = [#tpu.dimension_semantics<parallel>, #tpu.dimension_semantics<arbitrary>], iteration_bounds = array<i64: 1, 2>, scalar_prefetch = 0 : i64, scratch_operands = 1 : i64, tpu.core_type = #tpu.core_type<tc>, window_params = [{transform_indices = @transform_0, window_bounds = array<i64: 2, 24, 32>}, {transform_indices = @transform_1, window_bounds = array<i64: 1, 1, 32>}, {transform_indices = @transform_2, window_bounds = array<i64: 1, 1, 32>}, {transform_indices = @transform_3, window_bounds = array<i64: 1, 32, 96>}, {transform_indices = @transform_4, window_bounds = array<i64: 1, 1, 96>}, {transform_indices = @transform_5, window_bounds = array<i64: 1, 32, 32>}, {transform_indices = @transform_6, window_bounds = array<i64: 1, 1, 32>}, {transform_indices = @transform_7, window_bounds = array<i64: 1, 1, 32>}, {transform_indices = @transform_8, window_bounds = array<i64: 1, 1, 32>}, {transform_indices = @transform_9, window_bounds = array<i64: 1, 32, 64>}, {transform_indices = @transform_10, window_bounds = array<i64: 1, 1, 64>}, {transform_indices = @transform_11, window_bounds = array<i64: 1, 64, 32>}, {transform_indices = @transform_12, window_bounds = array<i64: 1, 1, 32>}, {pipeline_mode = #tpu.pipeline_mode<synchronous>, transform_indices = @transform_13, window_bounds = array<i64: 32, 16>}, {pipeline_mode = #tpu.pipeline_mode<synchronous>, transform_indices = @transform_14, window_bounds = array<i64: 1, 16>}, {pipeline_mode = #tpu.pipeline_mode<synchronous>, transform_indices = @transform_15, window_bounds = array<i64: 16, 128>}, {pipeline_mode = #tpu.pipeline_mode<synchronous>, transform_indices = @transform_16, window_bounds = array<i64: 1, 128>}, {transform_indices = @transform_17, window_bounds = array<i64: 2, 24, 32>}, {transform_indices = @transform_18, window_bounds = array<i64: 2, 1, 128>}]} {
    %c0_i32 = arith.constant 0 : i32
    %0 = arith.cmpi eq, %arg1, %c0_i32 : i32
    %1 = arith.extui %0 : i1 to i32
    %c0_i32_0 = arith.constant 0 : i32
    %2 = arith.cmpi ne, %1, %c0_i32_0 : i32
    scf.if %2 {
      %c0_89 = arith.constant 0 : index
      %c0_90 = arith.constant 0 : index
      %c0_91 = arith.constant 0 : index
      %200 = vector.load %arg2[%c0_89, %c0_90, %c0_91] : memref<2x24x32xf32, #tpu.memory_space<vmem>>, vector<2x24x32xf32>
      %c0_92 = arith.constant 0 : index
      %c0_93 = arith.constant 0 : index
      %c0_94 = arith.constant 0 : index
      %201 = vector.load %arg19[%c0_92, %c0_93, %c0_94] : memref<2x24x32xf32, #tpu.memory_space<vmem>>, vector<2x24x32xf32>
      tpu.vector_store %arg19[%c0_92, %c0_93, %c0_94], %200 {strides = array<i32>} : memref<2x24x32xf32, #tpu.memory_space<vmem>>, vector<2x24x32xf32>,
    } else {
    }
    %c0 = arith.constant 0 : index
    %c0_1 = arith.constant 0 : index
    %c0_2 = arith.constant 0 : index
    %3 = vector.load %arg19[%c0, %c0_1, %c0_2] : memref<2x24x32xf32, #tpu.memory_space<vmem>>, vector<2x24x32xf32>
    %4 = vector.shape_cast %3 : vector<2x24x32xf32> to vector<48x32xf32>
    %c0_3 = arith.constant 0 : index
    %c0_4 = arith.constant 0 : index
    %c0_5 = arith.constant 0 : index
    %5 = vector.load %arg3[%c0_3, %c0_4, %c0_5] : memref<1x1x32xf32, #tpu.memory_space<vmem>>, vector<1x1x32xf32>
    %6 = vector.shape_cast %5 : vector<1x1x32xf32> to vector<1x32xf32>
    %c0_6 = arith.constant 0 : index
    %c0_7 = arith.constant 0 : index
    %c0_8 = arith.constant 0 : index
    %7 = vector.load %arg4[%c0_6, %c0_7, %c0_8] : memref<1x1x32xf32, #tpu.memory_space<vmem>>, vector<1x1x32xf32>
    %8 = vector.shape_cast %7 : vector<1x1x32xf32> to vector<1x32xf32>
    %cst = arith.constant dense<0.000000e+00> : vector<48xf32>
    %9 = vector.multi_reduction <add>, %4, %cst [1] : vector<48x32xf32> to vector<48xf32>
    %10 = vector.shape_cast %9 : vector<48xf32> to vector<48x1xf32>
    %cst_9 = arith.constant 3.200000e+01 : f32
    %11 = vector.broadcast %cst_9 : f32 to vector<48x1xf32>
    %12 = arith.divf %10, %11 : vector<48x1xf32>
    %13 = vector.broadcast %12 : vector<48x1xf32> to vector<48x32xf32>
    %14 = arith.subf %4, %13 : vector<48x32xf32>
    %15 = arith.mulf %14, %14 : vector<48x32xf32>
    %cst_10 = arith.constant dense<0.000000e+00> : vector<48xf32>
    %16 = vector.multi_reduction <add>, %15, %cst_10 [1] : vector<48x32xf32> to vector<48xf32>
    %17 = vector.shape_cast %16 : vector<48xf32> to vector<48x1xf32>
    %cst_11 = arith.constant 3.200000e+01 : f32
    %18 = vector.broadcast %cst_11 : f32 to vector<48x1xf32>
    %19 = arith.divf %17, %18 : vector<48x1xf32>
    %20 = vector.broadcast %12 : vector<48x1xf32> to vector<48x32xf32>
    %21 = arith.subf %4, %20 : vector<48x32xf32>
    %cst_12 = arith.constant 9.99999974E-6 : f32
    %22 = vector.broadcast %cst_12 : f32 to vector<48x1xf32>
    %23 = arith.addf %19, %22 : vector<48x1xf32>
    %24 = math.rsqrt %23 : vector<48x1xf32>
    %25 = vector.broadcast %24 : vector<48x1xf32> to vector<48x32xf32>
    %26 = arith.mulf %21, %25 : vector<48x32xf32>
    %27 = vector.broadcast %6 : vector<1x32xf32> to vector<48x32xf32>
    %28 = arith.mulf %26, %27 : vector<48x32xf32>
    %29 = vector.broadcast %8 : vector<1x32xf32> to vector<48x32xf32>
    %30 = arith.addf %28, %29 : vector<48x32xf32>
    %31 = arith.truncf %30 : vector<48x32xf32> to vector<48x32xbf16>
    %c0_13 = arith.constant 0 : index
    %c0_14 = arith.constant 0 : index
    %c0_15 = arith.constant 0 : index
    %32 = vector.load %arg5[%c0_13, %c0_14, %c0_15] : memref<1x32x96xbf16, #tpu.memory_space<vmem>>, vector<1x32x96xbf16>
    %33 = vector.shape_cast %32 : vector<1x32x96xbf16> to vector<32x96xbf16>
    %cst_16 = arith.constant dense<0.000000e+00> : vector<48x96xf32>
    %34 = tpu.matmul %31, %33, %cst_16 {dimension_numbers = #tpu.dot_dimension_numbers<[1], [0], [0], [1], [0, 0, 1, 1], [], []>} : vector<48x32xbf16>, vector<32x96xbf16>, vector<48x96xf32> -> vector<48x96xf32>
    %c0_17 = arith.constant 0 : index
    %c0_18 = arith.constant 0 : index
    %c0_19 = arith.constant 0 : index
    %35 = vector.load %arg6[%c0_17, %c0_18, %c0_19] : memref<1x1x96xf32, #tpu.memory_space<vmem>>, vector<1x1x96xf32>
    %36 = vector.shape_cast %35 : vector<1x1x96xf32> to vector<1x96xf32>
    %37 = vector.broadcast %36 : vector<1x96xf32> to vector<48x96xf32>
    %38 = arith.addf %34, %37 : vector<48x96xf32>
    %39 = vector.shape_cast %38 : vector<48x96xf32> to vector<2x24x96xf32>
    %40 = tpu.iota {dimensions = array<i32: 2>} : vector<1x1x24xi32>
    %c17_i32 = arith.constant 17 : i32
    %41 = vector.broadcast %c17_i32 : i32 to vector<1x1x24xi32>
    %42 = arith.cmpi slt, %40, %41 : vector<1x1x24xi32>
    %43 = vector.extract_strided_slice %39 {offsets = [0, 0, 0], sizes = [2, 24, 8], strides = [1, 1, 1]} : vector<2x24x96xf32> to vector<2x24x8xf32>
    %44 = arith.truncf %43 : vector<2x24x8xf32> to vector<2x24x8xbf16>
    %45 = vector.extract_strided_slice %39 {offsets = [0, 0, 32], sizes = [2, 24, 8], strides = [1, 1, 1]} : vector<2x24x96xf32> to vector<2x24x8xf32>
    %46 = arith.truncf %45 : vector<2x24x8xf32> to vector<2x24x8xbf16>
    %47 = vector.extract_strided_slice %39 {offsets = [0, 0, 64], sizes = [2, 24, 8], strides = [1, 1, 1]} : vector<2x24x96xf32> to vector<2x24x8xf32>
    %48 = arith.truncf %47 : vector<2x24x8xf32> to vector<2x24x8xbf16>
    "tpu.trace_start"() <{level = 10 : i32, message = "bqd,bkd->bqk"}> : () -> ()
    %cst_20 = arith.constant dense<0.000000e+00> : vector<2x24x24xf32>
    %49 = tpu.matmul %44, %46, %cst_20 {dimension_numbers = #tpu.dot_dimension_numbers<[2], [2], [1], [1], [0, 0, 0, 1, 1, 1], [0], [0]>} : vector<2x24x8xbf16>, vector<2x24x8xbf16>, vector<2x24x24xf32> -> vector<2x24x24xf32>
    %cst_21 = arith.constant -1.000000e+30 : f32
    "tpu.trace_stop"() : () -> ()
    %50 = vector.shape_cast %42 : vector<1x1x24xi1> to vector<1x1x24xi1>
    %51 = vector.broadcast %50 : vector<1x1x24xi1> to vector<2x24x24xi1>
    %52 = vector.broadcast %cst_21 : f32 to vector<2x24x24xf32>
    %53 = arith.select %51, %49, %52 : vector<2x24x24xi1>, vector<2x24x24xf32>
    %cst_22 = arith.constant dense<0xFF800000> : vector<2x24xf32>
    %54 = vector.multi_reduction <maximumf>, %53, %cst_22 [2] : vector<2x24x24xf32> to vector<2x24xf32>
    %55 = vector.shape_cast %54 : vector<2x24xf32> to vector<2x24x1xf32>
    %56 = vector.broadcast %55 : vector<2x24x1xf32> to vector<2x24x24xf32>
    %57 = arith.subf %53, %56 : vector<2x24x24xf32>
    %58 = math.exp %57 : vector<2x24x24xf32>
    %cst_23 = arith.constant dense<0.000000e+00> : vector<2x24xf32>
    %59 = vector.multi_reduction <add>, %58, %cst_23 [2] : vector<2x24x24xf32> to vector<2x24xf32>
    %60 = vector.shape_cast %59 : vector<2x24xf32> to vector<2x24x1xf32>
    %61 = tpu.reciprocal %60 {approx = true} : vector<2x24x1xf32> -> vector<2x24x1xf32>
    %62 = vector.broadcast %61 : vector<2x24x1xf32> to vector<2x24x24xf32>
    %63 = arith.mulf %58, %62 : vector<2x24x24xf32>
    %64 = arith.truncf %63 : vector<2x24x24xf32> to vector<2x24x24xbf16>
    "tpu.trace_start"() <{level = 10 : i32, message = "bqk,bkd->bqd"}> : () -> ()
    %cst_24 = arith.constant dense<0.000000e+00> : vector<2x24x8xf32>
    %65 = tpu.matmul %64, %48, %cst_24 {dimension_numbers = #tpu.dot_dimension_numbers<[2], [1], [1], [2], [0, 0, 0, 1, 1, 2], [0], [0]>} : vector<2x24x24xbf16>, vector<2x24x8xbf16>, vector<2x24x8xf32> -> vector<2x24x8xf32>
    "tpu.trace_stop"() : () -> ()
    %c0_25 = arith.constant 0 : index
    %c0_26 = arith.constant 0 : index
    %c0_27 = arith.constant 0 : index
    %66 = vector.load %arg21[%c0_25, %c0_26, %c0_27] : memref<2x24x32xf32, #tpu.memory_space<vmem>>, vector<2x24x8xf32>
    tpu.vector_store %arg21[%c0_25, %c0_26, %c0_27], %65 {strides = array<i32>} : memref<2x24x32xf32, #tpu.memory_space<vmem>>, vector<2x24x8xf32>,
    %67 = vector.extract_strided_slice %39 {offsets = [0, 0, 8], sizes = [2, 24, 8], strides = [1, 1, 1]} : vector<2x24x96xf32> to vector<2x24x8xf32>
    %68 = arith.truncf %67 : vector<2x24x8xf32> to vector<2x24x8xbf16>
    %69 = vector.extract_strided_slice %39 {offsets = [0, 0, 40], sizes = [2, 24, 8], strides = [1, 1, 1]} : vector<2x24x96xf32> to vector<2x24x8xf32>
    %70 = arith.truncf %69 : vector<2x24x8xf32> to vector<2x24x8xbf16>
    %71 = vector.extract_strided_slice %39 {offsets = [0, 0, 72], sizes = [2, 24, 8], strides = [1, 1, 1]} : vector<2x24x96xf32> to vector<2x24x8xf32>
    %72 = arith.truncf %71 : vector<2x24x8xf32> to vector<2x24x8xbf16>
    "tpu.trace_start"() <{level = 10 : i32, message = "bqd,bkd->bqk"}> : () -> ()
    %cst_28 = arith.constant dense<0.000000e+00> : vector<2x24x24xf32>
    %73 = tpu.matmul %68, %70, %cst_28 {dimension_numbers = #tpu.dot_dimension_numbers<[2], [2], [1], [1], [0, 0, 0, 1, 1, 1], [0], [0]>} : vector<2x24x8xbf16>, vector<2x24x8xbf16>, vector<2x24x24xf32> -> vector<2x24x24xf32>
    %cst_29 = arith.constant -1.000000e+30 : f32
    "tpu.trace_stop"() : () -> ()
    %74 = vector.shape_cast %42 : vector<1x1x24xi1> to vector<1x1x24xi1>
    %75 = vector.broadcast %74 : vector<1x1x24xi1> to vector<2x24x24xi1>
    %76 = vector.broadcast %cst_29 : f32 to vector<2x24x24xf32>
    %77 = arith.select %75, %73, %76 : vector<2x24x24xi1>, vector<2x24x24xf32>
    %cst_30 = arith.constant dense<0xFF800000> : vector<2x24xf32>
    %78 = vector.multi_reduction <maximumf>, %77, %cst_30 [2] : vector<2x24x24xf32> to vector<2x24xf32>
    %79 = vector.shape_cast %78 : vector<2x24xf32> to vector<2x24x1xf32>
    %80 = vector.broadcast %79 : vector<2x24x1xf32> to vector<2x24x24xf32>
    %81 = arith.subf %77, %80 : vector<2x24x24xf32>
    %82 = math.exp %81 : vector<2x24x24xf32>
    %cst_31 = arith.constant dense<0.000000e+00> : vector<2x24xf32>
    %83 = vector.multi_reduction <add>, %82, %cst_31 [2] : vector<2x24x24xf32> to vector<2x24xf32>
    %84 = vector.shape_cast %83 : vector<2x24xf32> to vector<2x24x1xf32>
    %85 = tpu.reciprocal %84 {approx = true} : vector<2x24x1xf32> -> vector<2x24x1xf32>
    %86 = vector.broadcast %85 : vector<2x24x1xf32> to vector<2x24x24xf32>
    %87 = arith.mulf %82, %86 : vector<2x24x24xf32>
    %88 = arith.truncf %87 : vector<2x24x24xf32> to vector<2x24x24xbf16>
    "tpu.trace_start"() <{level = 10 : i32, message = "bqk,bkd->bqd"}> : () -> ()
    %cst_32 = arith.constant dense<0.000000e+00> : vector<2x24x8xf32>
    %89 = tpu.matmul %88, %72, %cst_32 {dimension_numbers = #tpu.dot_dimension_numbers<[2], [1], [1], [2], [0, 0, 0, 1, 1, 2], [0], [0]>} : vector<2x24x24xbf16>, vector<2x24x8xbf16>, vector<2x24x8xf32> -> vector<2x24x8xf32>
    "tpu.trace_stop"() : () -> ()
    %c0_33 = arith.constant 0 : index
    %c0_34 = arith.constant 0 : index
    %c8 = arith.constant 8 : index
    %90 = vector.load %arg21[%c0_33, %c0_34, %c8] : memref<2x24x32xf32, #tpu.memory_space<vmem>>, vector<2x24x8xf32>
    tpu.vector_store %arg21[%c0_33, %c0_34, %c8], %89 {strides = array<i32>} : memref<2x24x32xf32, #tpu.memory_space<vmem>>, vector<2x24x8xf32>,
    %91 = vector.extract_strided_slice %39 {offsets = [0, 0, 16], sizes = [2, 24, 8], strides = [1, 1, 1]} : vector<2x24x96xf32> to vector<2x24x8xf32>
    %92 = arith.truncf %91 : vector<2x24x8xf32> to vector<2x24x8xbf16>
    %93 = vector.extract_strided_slice %39 {offsets = [0, 0, 48], sizes = [2, 24, 8], strides = [1, 1, 1]} : vector<2x24x96xf32> to vector<2x24x8xf32>
    %94 = arith.truncf %93 : vector<2x24x8xf32> to vector<2x24x8xbf16>
    %95 = vector.extract_strided_slice %39 {offsets = [0, 0, 80], sizes = [2, 24, 8], strides = [1, 1, 1]} : vector<2x24x96xf32> to vector<2x24x8xf32>
    %96 = arith.truncf %95 : vector<2x24x8xf32> to vector<2x24x8xbf16>
    "tpu.trace_start"() <{level = 10 : i32, message = "bqd,bkd->bqk"}> : () -> ()
    %cst_35 = arith.constant dense<0.000000e+00> : vector<2x24x24xf32>
    %97 = tpu.matmul %92, %94, %cst_35 {dimension_numbers = #tpu.dot_dimension_numbers<[2], [2], [1], [1], [0, 0, 0, 1, 1, 1], [0], [0]>} : vector<2x24x8xbf16>, vector<2x24x8xbf16>, vector<2x24x24xf32> -> vector<2x24x24xf32>
    %cst_36 = arith.constant -1.000000e+30 : f32
    "tpu.trace_stop"() : () -> ()
    %98 = vector.shape_cast %42 : vector<1x1x24xi1> to vector<1x1x24xi1>
    %99 = vector.broadcast %98 : vector<1x1x24xi1> to vector<2x24x24xi1>
    %100 = vector.broadcast %cst_36 : f32 to vector<2x24x24xf32>
    %101 = arith.select %99, %97, %100 : vector<2x24x24xi1>, vector<2x24x24xf32>
    %cst_37 = arith.constant dense<0xFF800000> : vector<2x24xf32>
    %102 = vector.multi_reduction <maximumf>, %101, %cst_37 [2] : vector<2x24x24xf32> to vector<2x24xf32>
    %103 = vector.shape_cast %102 : vector<2x24xf32> to vector<2x24x1xf32>
    %104 = vector.broadcast %103 : vector<2x24x1xf32> to vector<2x24x24xf32>
    %105 = arith.subf %101, %104 : vector<2x24x24xf32>
    %106 = math.exp %105 : vector<2x24x24xf32>
    %cst_38 = arith.constant dense<0.000000e+00> : vector<2x24xf32>
    %107 = vector.multi_reduction <add>, %106, %cst_38 [2] : vector<2x24x24xf32> to vector<2x24xf32>
    %108 = vector.shape_cast %107 : vector<2x24xf32> to vector<2x24x1xf32>
    %109 = tpu.reciprocal %108 {approx = true} : vector<2x24x1xf32> -> vector<2x24x1xf32>
    %110 = vector.broadcast %109 : vector<2x24x1xf32> to vector<2x24x24xf32>
    %111 = arith.mulf %106, %110 : vector<2x24x24xf32>
    %112 = arith.truncf %111 : vector<2x24x24xf32> to vector<2x24x24xbf16>
    "tpu.trace_start"() <{level = 10 : i32, message = "bqk,bkd->bqd"}> : () -> ()
    %cst_39 = arith.constant dense<0.000000e+00> : vector<2x24x8xf32>
    %113 = tpu.matmul %112, %96, %cst_39 {dimension_numbers = #tpu.dot_dimension_numbers<[2], [1], [1], [2], [0, 0, 0, 1, 1, 2], [0], [0]>} : vector<2x24x24xbf16>, vector<2x24x8xbf16>, vector<2x24x8xf32> -> vector<2x24x8xf32>
    "tpu.trace_stop"() : () -> ()
    %c0_40 = arith.constant 0 : index
    %c0_41 = arith.constant 0 : index
    %c16 = arith.constant 16 : index
    %114 = vector.load %arg21[%c0_40, %c0_41, %c16] : memref<2x24x32xf32, #tpu.memory_space<vmem>>, vector<2x24x8xf32>
    tpu.vector_store %arg21[%c0_40, %c0_41, %c16], %113 {strides = array<i32>} : memref<2x24x32xf32, #tpu.memory_space<vmem>>, vector<2x24x8xf32>,
    %115 = vector.extract_strided_slice %39 {offsets = [0, 0, 24], sizes = [2, 24, 8], strides = [1, 1, 1]} : vector<2x24x96xf32> to vector<2x24x8xf32>
    %116 = arith.truncf %115 : vector<2x24x8xf32> to vector<2x24x8xbf16>
    %117 = vector.extract_strided_slice %39 {offsets = [0, 0, 56], sizes = [2, 24, 8], strides = [1, 1, 1]} : vector<2x24x96xf32> to vector<2x24x8xf32>
    %118 = arith.truncf %117 : vector<2x24x8xf32> to vector<2x24x8xbf16>
    %119 = vector.extract_strided_slice %39 {offsets = [0, 0, 88], sizes = [2, 24, 8], strides = [1, 1, 1]} : vector<2x24x96xf32> to vector<2x24x8xf32>
    %120 = arith.truncf %119 : vector<2x24x8xf32> to vector<2x24x8xbf16>
    "tpu.trace_start"() <{level = 10 : i32, message = "bqd,bkd->bqk"}> : () -> ()
    %cst_42 = arith.constant dense<0.000000e+00> : vector<2x24x24xf32>
    %121 = tpu.matmul %116, %118, %cst_42 {dimension_numbers = #tpu.dot_dimension_numbers<[2], [2], [1], [1], [0, 0, 0, 1, 1, 1], [0], [0]>} : vector<2x24x8xbf16>, vector<2x24x8xbf16>, vector<2x24x24xf32> -> vector<2x24x24xf32>
    %cst_43 = arith.constant -1.000000e+30 : f32
    "tpu.trace_stop"() : () -> ()
    %122 = vector.shape_cast %42 : vector<1x1x24xi1> to vector<1x1x24xi1>
    %123 = vector.broadcast %122 : vector<1x1x24xi1> to vector<2x24x24xi1>
    %124 = vector.broadcast %cst_43 : f32 to vector<2x24x24xf32>
    %125 = arith.select %123, %121, %124 : vector<2x24x24xi1>, vector<2x24x24xf32>
    %cst_44 = arith.constant dense<0xFF800000> : vector<2x24xf32>
    %126 = vector.multi_reduction <maximumf>, %125, %cst_44 [2] : vector<2x24x24xf32> to vector<2x24xf32>
    %127 = vector.shape_cast %126 : vector<2x24xf32> to vector<2x24x1xf32>
    %128 = vector.broadcast %127 : vector<2x24x1xf32> to vector<2x24x24xf32>
    %129 = arith.subf %125, %128 : vector<2x24x24xf32>
    %130 = math.exp %129 : vector<2x24x24xf32>
    %cst_45 = arith.constant dense<0.000000e+00> : vector<2x24xf32>
    %131 = vector.multi_reduction <add>, %130, %cst_45 [2] : vector<2x24x24xf32> to vector<2x24xf32>
    %132 = vector.shape_cast %131 : vector<2x24xf32> to vector<2x24x1xf32>
    %133 = tpu.reciprocal %132 {approx = true} : vector<2x24x1xf32> -> vector<2x24x1xf32>
    %134 = vector.broadcast %133 : vector<2x24x1xf32> to vector<2x24x24xf32>
    %135 = arith.mulf %130, %134 : vector<2x24x24xf32>
    %136 = arith.truncf %135 : vector<2x24x24xf32> to vector<2x24x24xbf16>
    "tpu.trace_start"() <{level = 10 : i32, message = "bqk,bkd->bqd"}> : () -> ()
    %cst_46 = arith.constant dense<0.000000e+00> : vector<2x24x8xf32>
    %137 = tpu.matmul %136, %120, %cst_46 {dimension_numbers = #tpu.dot_dimension_numbers<[2], [1], [1], [2], [0, 0, 0, 1, 1, 2], [0], [0]>} : vector<2x24x24xbf16>, vector<2x24x8xbf16>, vector<2x24x8xf32> -> vector<2x24x8xf32>
    "tpu.trace_stop"() : () -> ()
    %c0_47 = arith.constant 0 : index
    %c0_48 = arith.constant 0 : index
    %c24 = arith.constant 24 : index
    %138 = vector.load %arg21[%c0_47, %c0_48, %c24] : memref<2x24x32xf32, #tpu.memory_space<vmem>>, vector<2x24x8xf32>
    tpu.vector_store %arg21[%c0_47, %c0_48, %c24], %137 {strides = array<i32>} : memref<2x24x32xf32, #tpu.memory_space<vmem>>, vector<2x24x8xf32>,
    %c0_49 = arith.constant 0 : index
    %c0_50 = arith.constant 0 : index
    %c0_51 = arith.constant 0 : index
    %139 = vector.load %arg21[%c0_49, %c0_50, %c0_51] : memref<2x24x32xf32, #tpu.memory_space<vmem>>, vector<2x24x32xf32>
    %140 = vector.shape_cast %139 : vector<2x24x32xf32> to vector<48x32xf32>
    %141 = arith.truncf %140 : vector<48x32xf32> to vector<48x32xbf16>
    %c0_52 = arith.constant 0 : index
    %c0_53 = arith.constant 0 : index
    %c0_54 = arith.constant 0 : index
    %142 = vector.load %arg7[%c0_52, %c0_53, %c0_54] : memref<1x32x32xbf16, #tpu.memory_space<vmem>>, vector<1x32x32xbf16>
    %143 = vector.shape_cast %142 : vector<1x32x32xbf16> to vector<32x32xbf16>
    %cst_55 = arith.constant dense<0.000000e+00> : vector<48x32xf32>
    %144 = tpu.matmul %141, %143, %cst_55 {dimension_numbers = #tpu.dot_dimension_numbers<[1], [0], [0], [1], [0, 0, 1, 1], [], []>} : vector<48x32xbf16>, vector<32x32xbf16>, vector<48x32xf32> -> vector<48x32xf32>
    %145 = arith.addf %4, %144 : vector<48x32xf32>
    %c0_56 = arith.constant 0 : index
    %c0_57 = arith.constant 0 : index
    %c0_58 = arith.constant 0 : index
    %146 = vector.load %arg8[%c0_56, %c0_57, %c0_58] : memref<1x1x32xf32, #tpu.memory_space<vmem>>, vector<1x1x32xf32>
    %147 = vector.shape_cast %146 : vector<1x1x32xf32> to vector<1x32xf32>
    %148 = vector.broadcast %147 : vector<1x32xf32> to vector<48x32xf32>
    %149 = arith.addf %145, %148 : vector<48x32xf32>
    %c0_59 = arith.constant 0 : index
    %c0_60 = arith.constant 0 : index
    %c0_61 = arith.constant 0 : index
    %150 = vector.load %arg9[%c0_59, %c0_60, %c0_61] : memref<1x1x32xf32, #tpu.memory_space<vmem>>, vector<1x1x32xf32>
    %151 = vector.shape_cast %150 : vector<1x1x32xf32> to vector<1x32xf32>
    %c0_62 = arith.constant 0 : index
    %c0_63 = arith.constant 0 : index
    %c0_64 = arith.constant 0 : index
    %152 = vector.load %arg10[%c0_62, %c0_63, %c0_64] : memref<1x1x32xf32, #tpu.memory_space<vmem>>, vector<1x1x32xf32>
    %153 = vector.shape_cast %152 : vector<1x1x32xf32> to vector<1x32xf32>
    %cst_65 = arith.constant dense<0.000000e+00> : vector<48xf32>
    %154 = vector.multi_reduction <add>, %149, %cst_65 [1] : vector<48x32xf32> to vector<48xf32>
    %155 = vector.shape_cast %154 : vector<48xf32> to vector<48x1xf32>
    %cst_66 = arith.constant 3.200000e+01 : f32
    %156 = vector.broadcast %cst_66 : f32 to vector<48x1xf32>
    %157 = arith.divf %155, %156 : vector<48x1xf32>
    %158 = vector.broadcast %157 : vector<48x1xf32> to vector<48x32xf32>
    %159 = arith.subf %149, %158 : vector<48x32xf32>
    %160 = arith.mulf %159, %159 : vector<48x32xf32>
    %cst_67 = arith.constant dense<0.000000e+00> : vector<48xf32>
    %161 = vector.multi_reduction <add>, %160, %cst_67 [1] : vector<48x32xf32> to vector<48xf32>
    %162 = vector.shape_cast %161 : vector<48xf32> to vector<48x1xf32>
    %cst_68 = arith.constant 3.200000e+01 : f32
    %163 = vector.broadcast %cst_68 : f32 to vector<48x1xf32>
    %164 = arith.divf %162, %163 : vector<48x1xf32>
    %165 = vector.broadcast %157 : vector<48x1xf32> to vector<48x32xf32>
    %166 = arith.subf %149, %165 : vector<48x32xf32>
    %cst_69 = arith.constant 9.99999974E-6 : f32
    %167 = vector.broadcast %cst_69 : f32 to vector<48x1xf32>
    %168 = arith.addf %164, %167 : vector<48x1xf32>
    %169 = math.rsqrt %168 : vector<48x1xf32>
    %170 = vector.broadcast %169 : vector<48x1xf32> to vector<48x32xf32>
    %171 = arith.mulf %166, %170 : vector<48x32xf32>
    %172 = vector.broadcast %151 : vector<1x32xf32> to vector<48x32xf32>
    %173 = arith.mulf %171, %172 : vector<48x32xf32>
    %174 = vector.broadcast %153 : vector<1x32xf32> to vector<48x32xf32>
    %175 = arith.addf %173, %174 : vector<48x32xf32>
    %176 = arith.truncf %175 : vector<48x32xf32> to vector<48x32xbf16>
    %c0_70 = arith.constant 0 : index
    %c0_71 = arith.constant 0 : index
    %c0_72 = arith.constant 0 : index
    %177 = vector.load %arg11[%c0_70, %c0_71, %c0_72] : memref<1x32x64xbf16, #tpu.memory_space<vmem>>, vector<1x32x64xbf16>
    %178 = vector.shape_cast %177 : vector<1x32x64xbf16> to vector<32x64xbf16>
    %cst_73 = arith.constant dense<0.000000e+00> : vector<48x64xf32>
    %179 = tpu.matmul %176, %178, %cst_73 {dimension_numbers = #tpu.dot_dimension_numbers<[1], [0], [0], [1], [0, 0, 1, 1], [], []>} : vector<48x32xbf16>, vector<32x64xbf16>, vector<48x64xf32> -> vector<48x64xf32>
    %c0_74 = arith.constant 0 : index
    %c0_75 = arith.constant 0 : index
    %c0_76 = arith.constant 0 : index
    %180 = vector.load %arg12[%c0_74, %c0_75, %c0_76] : memref<1x1x64xf32, #tpu.memory_space<vmem>>, vector<1x1x64xf32>
    %181 = vector.shape_cast %180 : vector<1x1x64xf32> to vector<1x64xf32>
    %182 = vector.broadcast %181 : vector<1x64xf32> to vector<48x64xf32>
    %183 = arith.addf %179, %182 : vector<48x64xf32>
    %cst_77 = arith.constant 0.000000e+00 : f32
    %184 = vector.broadcast %cst_77 : f32 to vector<48x64xf32>
    %185 = arith.maximumf %183, %184 : vector<48x64xf32>
    %186 = arith.truncf %185 : vector<48x64xf32> to vector<48x64xbf16>
    %c0_78 = arith.constant 0 : index
    %c0_79 = arith.constant 0 : index
    %c0_80 = arith.constant 0 : index
    %187 = vector.load %arg13[%c0_78, %c0_79, %c0_80] : memref<1x64x32xbf16, #tpu.memory_space<vmem>>, vector<1x64x32xbf16>
    %188 = vector.shape_cast %187 : vector<1x64x32xbf16> to vector<64x32xbf16>
    %cst_81 = arith.constant dense<0.000000e+00> : vector<48x32xf32>
    %189 = tpu.matmul %186, %188, %cst_81 {dimension_numbers = #tpu.dot_dimension_numbers<[1], [0], [0], [1], [0, 0, 1, 1], [], []>} : vector<48x64xbf16>, vector<64x32xbf16>, vector<48x32xf32> -> vector<48x32xf32>
    %c0_82 = arith.constant 0 : index
    %c0_83 = arith.constant 0 : index
    %c0_84 = arith.constant 0 : index
    %190 = vector.load %arg14[%c0_82, %c0_83, %c0_84] : memref<1x1x32xf32, #tpu.memory_space<vmem>>, vector<1x1x32xf32>
    %191 = vector.shape_cast %190 : vector<1x1x32xf32> to vector<1x32xf32>
    %192 = vector.broadcast %191 : vector<1x32xf32> to vector<48x32xf32>
    %193 = arith.addf %189, %192 : vector<48x32xf32>
    %194 = arith.addf %149, %193 : vector<48x32xf32>
    %195 = vector.shape_cast %194 : vector<48x32xf32> to vector<2x24x32xf32>
    %c0_85 = arith.constant 0 : index
    %c0_86 = arith.constant 0 : index
    %c0_87 = arith.constant 0 : index
    %196 = vector.load %arg19[%c0_85, %c0_86, %c0_87] : memref<2x24x32xf32, #tpu.memory_space<vmem>>, vector<2x24x32xf32>
    tpu.vector_store %arg19[%c0_85, %c0_86, %c0_87], %195 {strides = array<i32>} : memref<2x24x32xf32, #tpu.memory_space<vmem>>, vector<2x24x32xf32>,
    %c1_i32 = arith.constant 1 : i32
    %197 = arith.cmpi eq, %arg1, %c1_i32 : i32
    %198 = arith.extui %197 : i1 to i32
    %c0_i32_88 = arith.constant 0 : i32
    %199 = arith.cmpi ne, %198, %c0_i32_88 : i32
    scf.if %199 {
      %200 = vector.extract_strided_slice %195 {offsets = [0, 0, 0], sizes = [2, 1, 32], strides = [1, 1, 1]} : vector<2x24x32xf32> to vector<2x1x32xf32>
      %201 = vector.shape_cast %200 : vector<2x1x32xf32> to vector<2x32xf32>
      %202 = arith.truncf %201 : vector<2x32xf32> to vector<2x32xbf16>
      %c0_89 = arith.constant 0 : index
      %c0_90 = arith.constant 0 : index
      %203 = vector.load %arg15[%c0_89, %c0_90] : memref<32x16xbf16, #tpu.memory_space<vmem>>, vector<32x16xbf16>
      %cst_91 = arith.constant dense<0.000000e+00> : vector<2x16xf32>
      %204 = tpu.matmul %202, %203, %cst_91 {dimension_numbers = #tpu.dot_dimension_numbers<[1], [0], [0], [1], [0, 0, 1, 1], [], []>} : vector<2x32xbf16>, vector<32x16xbf16>, vector<2x16xf32> -> vector<2x16xf32>
      %c0_92 = arith.constant 0 : index
      %c0_93 = arith.constant 0 : index
      %205 = vector.load %arg16[%c0_92, %c0_93] : memref<1x16xf32, #tpu.memory_space<vmem>>, vector<1x16xf32>
      %206 = vector.broadcast %205 : vector<1x16xf32> to vector<2x16xf32>
      %207 = arith.addf %204, %206 : vector<2x16xf32>
      %cst_94 = arith.constant 5.000000e-01 : f32
      %208 = vector.broadcast %cst_94 : f32 to vector<2x16xf32>
      %209 = arith.mulf %208, %207 : vector<2x16xf32>
      %cst_95 = arith.constant 0.707106769 : f32
      %210 = vector.broadcast %cst_95 : f32 to vector<2x16xf32>
      %211 = arith.mulf %207, %210 : vector<2x16xf32>
      %212 = math.erf %211 : vector<2x16xf32>
      %cst_96 = arith.constant 1.000000e+00 : f32
      %213 = vector.broadcast %cst_96 : f32 to vector<2x16xf32>
      %214 = arith.addf %213, %212 : vector<2x16xf32>
      %215 = arith.mulf %209, %214 : vector<2x16xf32>
      %216 = arith.truncf %215 : vector<2x16xf32> to vector<2x16xbf16>
      %c0_97 = arith.constant 0 : index
      %c0_98 = arith.constant 0 : index
      %217 = vector.load %arg17[%c0_97, %c0_98] : memref<16x128xbf16, #tpu.memory_space<vmem>>, vector<16x128xbf16>
      %cst_99 = arith.constant dense<0.000000e+00> : vector<2x128xf32>
      %218 = tpu.matmul %216, %217, %cst_99 {dimension_numbers = #tpu.dot_dimension_numbers<[1], [0], [0], [1], [0, 0, 1, 1], [], []>} : vector<2x16xbf16>, vector<16x128xbf16>, vector<2x128xf32> -> vector<2x128xf32>
      %c0_100 = arith.constant 0 : index
      %c0_101 = arith.constant 0 : index
      %219 = vector.load %arg18[%c0_100, %c0_101] : memref<1x128xf32, #tpu.memory_space<vmem>>, vector<1x128xf32>
      %220 = vector.broadcast %219 : vector<1x128xf32> to vector<2x128xf32>
      %221 = arith.addf %218, %220 : vector<2x128xf32>
      %222 = vector.shape_cast %221 : vector<2x128xf32> to vector<2x1x128xf32>
      %c0_102 = arith.constant 0 : index
      %c0_103 = arith.constant 0 : index
      %c0_104 = arith.constant 0 : index
      %223 = vector.load %arg20[%c0_102, %c0_103, %c0_104] : memref<2x1x128xf32, #tpu.memory_space<vmem>>, vector<2x1x128xf32>
      tpu.vector_store %arg20[%c0_102, %c0_103, %c0_104], %222 {strides = array<i32>} : memref<2x1x128xf32, #tpu.memory_space<vmem>>, vector<2x1x128xf32>,
    } else {
    }
    return
  }
  func.func @transform_0(%arg0: i32, %arg1: i32) -> (i32, i32, i32) {
    %c0_i32 = arith.constant 0 : i32
    %c0_i32_0 = arith.constant 0 : i32
    %c0_i32_1 = arith.constant 0 : i32
    return %arg0, %c0_i32, %c0_i32_0 : i32, i32, i32
  }
  func.func @transform_1(%arg0: i32, %arg1: i32) -> (i32, i32, i32) {
    %c0_i32 = arith.constant 0 : i32
    %c0_i32_0 = arith.constant 0 : i32
    %c0_i32_1 = arith.constant 0 : i32
    return %arg1, %c0_i32, %c0_i32_0 : i32, i32, i32
  }
  func.func @transform_2(%arg0: i32, %arg1: i32) -> (i32, i32, i32) {
    %c0_i32 = arith.constant 0 : i32
    %c0_i32_0 = arith.constant 0 : i32
    %c0_i32_1 = arith.constant 0 : i32
    return %arg1, %c0_i32, %c0_i32_0 : i32, i32, i32
  }
  func.func @transform_3(%arg0: i32, %arg1: i32) -> (i32, i32, i32) {
    %c0_i32 = arith.constant 0 : i32
    %c0_i32_0 = arith.constant 0 : i32
    %c0_i32_1 = arith.constant 0 : i32
    return %arg1, %c0_i32, %c0_i32_0 : i32, i32, i32
  }
  func.func @transform_4(%arg0: i32, %arg1: i32) -> (i32, i32, i32) {
    %c0_i32 = arith.constant 0 : i32
    %c0_i32_0 = arith.constant 0 : i32
    %c0_i32_1 = arith.constant 0 : i32
    return %arg1, %c0_i32, %c0_i32_0 : i32, i32, i32
  }
  func.func @transform_5(%arg0: i32, %arg1: i32) -> (i32, i32, i32) {
    %c0_i32 = arith.constant 0 : i32
    %c0_i32_0 = arith.constant 0 : i32
    %c0_i32_1 = arith.constant 0 : i32
    return %arg1, %c0_i32, %c0_i32_0 : i32, i32, i32
  }
  func.func @transform_6(%arg0: i32, %arg1: i32) -> (i32, i32, i32) {
    %c0_i32 = arith.constant 0 : i32
    %c0_i32_0 = arith.constant 0 : i32
    %c0_i32_1 = arith.constant 0 : i32
    return %arg1, %c0_i32, %c0_i32_0 : i32, i32, i32
  }
  func.func @transform_7(%arg0: i32, %arg1: i32) -> (i32, i32, i32) {
    %c0_i32 = arith.constant 0 : i32
    %c0_i32_0 = arith.constant 0 : i32
    %c0_i32_1 = arith.constant 0 : i32
    return %arg1, %c0_i32, %c0_i32_0 : i32, i32, i32
  }
  func.func @transform_8(%arg0: i32, %arg1: i32) -> (i32, i32, i32) {
    %c0_i32 = arith.constant 0 : i32
    %c0_i32_0 = arith.constant 0 : i32
    %c0_i32_1 = arith.constant 0 : i32
    return %arg1, %c0_i32, %c0_i32_0 : i32, i32, i32
  }
  func.func @transform_9(%arg0: i32, %arg1: i32) -> (i32, i32, i32) {
    %c0_i32 = arith.constant 0 : i32
    %c0_i32_0 = arith.constant 0 : i32
    %c0_i32_1 = arith.constant 0 : i32
    return %arg1, %c0_i32, %c0_i32_0 : i32, i32, i32
  }
  func.func @transform_10(%arg0: i32, %arg1: i32) -> (i32, i32, i32) {
    %c0_i32 = arith.constant 0 : i32
    %c0_i32_0 = arith.constant 0 : i32
    %c0_i32_1 = arith.constant 0 : i32
    return %arg1, %c0_i32, %c0_i32_0 : i32, i32, i32
  }
  func.func @transform_11(%arg0: i32, %arg1: i32) -> (i32, i32, i32) {
    %c0_i32 = arith.constant 0 : i32
    %c0_i32_0 = arith.constant 0 : i32
    %c0_i32_1 = arith.constant 0 : i32
    return %arg1, %c0_i32, %c0_i32_0 : i32, i32, i32
  }
  func.func @transform_12(%arg0: i32, %arg1: i32) -> (i32, i32, i32) {
    %c0_i32 = arith.constant 0 : i32
    %c0_i32_0 = arith.constant 0 : i32
    %c0_i32_1 = arith.constant 0 : i32
    return %arg1, %c0_i32, %c0_i32_0 : i32, i32, i32
  }
  func.func @transform_13(%arg0: i32, %arg1: i32) -> (i32, i32) {
    %c0_i32 = arith.constant 0 : i32
    %c0_i32_0 = arith.constant 0 : i32
    %c0_i32_1 = arith.constant 0 : i32
    return %c0_i32, %c0_i32_0 : i32, i32
  }
  func.func @transform_14(%arg0: i32, %arg1: i32) -> (i32, i32) {
    %c0_i32 = arith.constant 0 : i32
    %c0_i32_0 = arith.constant 0 : i32
    %c0_i32_1 = arith.constant 0 : i32
    return %c0_i32, %c0_i32_0 : i32, i32
  }
  func.func @transform_15(%arg0: i32, %arg1: i32) -> (i32, i32) {
    %c0_i32 = arith.constant 0 : i32
    %c0_i32_0 = arith.constant 0 : i32
    %c0_i32_1 = arith.constant 0 : i32
    return %c0_i32, %c0_i32_0 : i32, i32
  }
  func.func @transform_16(%arg0: i32, %arg1: i32) -> (i32, i32) {
    %c0_i32 = arith.constant 0 : i32
    %c0_i32_0 = arith.constant 0 : i32
    %c0_i32_1 = arith.constant 0 : i32
    return %c0_i32, %c0_i32_0 : i32, i32
  }
  func.func @transform_17(%arg0: i32, %arg1: i32) -> (i32, i32, i32) {
    %c0_i32 = arith.constant 0 : i32
    %c0_i32_0 = arith.constant 0 : i32
    %c0_i32_1 = arith.constant 0 : i32
    return %arg0, %c0_i32, %c0_i32_0 : i32, i32, i32
  }
  func.func @transform_18(%arg0: i32, %arg1: i32) -> (i32, i32, i32) {
    %c0_i32 = arith.constant 0 : i32
    %c0_i32_0 = arith.constant 0 : i32
    %c0_i32_1 = arith.constant 0 : i32
    return %arg0, %c0_i32, %c0_i32_0 : i32, i32, i32
  }
}

</mosaic_0001>

<bundles_post_ra>
// kernel: vit_forward.1
= control target key start
LH: loop header
LB: loop body
LE: loop exit
PB: predicated region body
PF: predicated region fallthrough
CT: control target
= control target key end

     0   :  { %s4211_s0 = inlined_call_operand.vmem [shape: f32[2,24,32], index: 0, kind: input, shape index: {}]   ;;  %s4212_s1 = inlined_call_operand.vmem [shape: f32[2,1,32], index: 1, kind: input, shape index: {}]   ;;  %s4213_s2 = inlined_call_operand.vmem [shape: f32[2,1,32], index: 2, kind: input, shape index: {}]   ;;  %s4214_s3 = inlined_call_operand.vmem [shape: bf16[2,32,96], index: 3, kind: input, shape index: {}]   ;;  %s4215_s4 = inlined_call_operand.vmem [shape: f32[2,1,96], index: 4, kind: input, shape index: {}]   ;;  %s4216_s5 = inlined_call_operand.vmem [shape: bf16[2,32,32], index: 5, kind: input, shape index: {}]   ;;  %s4217_s6 = inlined_call_operand.vmem [shape: f32[2,1,32], index: 6, kind: input, shape index: {}]   ;;  %s4218_s7 = inlined_call_operand.vmem [shape: f32[2,1,32], index: 7, kind: input, shape index: {}]   ;;  %s4219_s8 = inlined_call_operand.vmem [shape: f32[2,1,32], index: 8, kind: input, shape index: {}]   ;;  %s4220_s9 = inlined_call_operand.vmem [shape: bf16[2,32,64], index: 9, kind: input, shape index: {}]   ;;  %s4221_s10 = inlined_call_operand.vmem [shape: f32[2,1,64], index: 10, kind: input, shape index: {}]   ;;  %s4222_s11 = inlined_call_operand.vmem [shape: bf16[2,64,32], index: 11, kind: input, shape index: {}]   ;;  %s4223_s12 = inlined_call_operand.vmem [shape: f32[2,1,32], index: 12, kind: input, shape index: {}]   ;;  %s4224_s13 = inlined_call_operand.vmem [shape: bf16[32,16], index: 13, kind: input, shape index: {}]   ;;  %s4225_s14 = inlined_call_operand.vmem [shape: f32[1,16], index: 14, kind: input, shape index: {}]   ;;  %s4226_s15 = inlined_call_operand.vmem [shape: bf16[16,128], index: 15, kind: input, shape index: {}]   ;;  %s4227_s16 = inlined_call_operand.vmem [shape: f32[1,128], index: 16, kind: input, shape index: {}]   ;;  %s4228_s17 = inlined_call_operand.vmem [shape: f32[2,24,32], index: 17, kind: output, shape index: {0}]   ;;  %s4229_s18 = inlined_call_operand.hbm [shape: f32[2,1,128], index: 18, kind: output, shape index: {1}]  }
   0x1   :  { %4233 = sst [smem:[#allocation9_spill]] %s4211_s0 }
   0x2   :  { %4234 = sst [smem:[#allocation10_spill]] %s4212_s1 }
   0x3   :  { %4235 = sst [smem:[#allocation11_spill]] %s4213_s2 }
   0x4   :  { %4236 = sst [smem:[#allocation12_spill]] %s4214_s3 }
   0x5   :  { %4237 = sst [smem:[#allocation13_spill]] %s4216_s5 }
   0x6   :  { %4238 = sst [smem:[#allocation14_spill]] %s4225_s14 }
   0x7   :  { %4239 = sst [smem:[#allocation15_spill]] %s4226_s15 }
   0x8   :  { %4240 = sst [smem:[#allocation16_spill]] %s4227_s16 }
   0x9   :  { %4241 = sst [smem:[#allocation17_spill]] %s4229_s18 }
   0xa   :  { %24 = vsyncpa [#allocation4], 0  ;;  %s3305_s27 = smov 0   ;;  %s3307_s28 = smov 0  }
   0xb   :  { %s3309_s29 = smov 0  }
   0xc LB: > { %4242 = sst [smem:[#allocation6_spill]] %s3187_s28  ;;  %s39_s0 = sadd.s32 1, %s3187_s28  ;;  %s3191_s29 = sphi %s3309_s29, %s30_s29   ;;  %s3187_s28 = sphi %s3307_s28, %s4266_s28   ;;  %s3183_s27 = sphi %s3305_s27, %s4265_s27  }
   0xd   : > { %4243 = sst [smem:[#allocation7_spill]] %s3191_s29  ;;  %p40_p0 = scmp.ge.s32.totalorder %s39_s0, 2 }
   0xe   : > { %p2815_p1 = scmp.ge.s32.totalorder %s3191_s29, 1  ;;  %p634_p2 = scmp.lt.s32.totalorder %s3191_s29, 3 }
   0xf   : > { %s4268_s0 = smov (%p40_p0, %s39_s0), 0 }
  0x10   : > { %4244 = sst [smem:[#allocation8_spill]] %s4268_s0  ;;  %p635_p3 = pnand %p2815_p1, %p634_p2 }
  0x11   : > { %p741_p4 = scmp.lt.s32.totalorder (!%p635_p3), %s3183_s27, 1  ;;  %s4247_s3 = sld [smem:[#allocation12_spill]] (!%p635_p3) }
  0x12   : > { %638 = sbr.rel (%p635_p3) target bundleno = 2476 (0x9ac), region = 88  ;;  %s4248_s5 = sld [smem:[#allocation13_spill]] (!%p635_p3) }
  0x13   : > { %p2824_p5 = scmp.ne.s32.totalorder (!%p635_p3), %s3183_s27, 0 }
  0x17   : > { %s3328_s19 = scalar_select %p741_p4, %s3183_s27, 1 }
  0x18   : > { %s4249_s1 = sld [smem:[#allocation9_spill]] (!%p2824_p5) }
  0x19   : > { %s2931_s26 = sshll.u32 %s3328_s19, 4  ;;  %s765_s25 = scalar_lea.vmem %s4218_s7, %s3328_s19 }
  0x1a   : > { %s3346_s18 = scalar_lea.vmem %s4247_s3, %s2931_s26  ;;  %s3351_s15 = scalar_lea.vmem %s4248_s5, %s2931_s26 }
  0x1b   : > { %s768_s28 = scalar_lea.vmem %s4219_s8, %s3328_s19  ;;  %s3368_s3 = scalar_lea.vmem %s4220_s9, %s2931_s26 }
  0x1c   : > { %s2934_s14 = sshll.u32 %s3328_s19, 5  ;;  %797 = sbr.rel (%p2824_p5) target bundleno = 40 (0x28), region = 92 }
  0x1d   : > { %s3378_s2 = scalar_lea.vmem %s4222_s11, %s2934_s14 }
  0x21   : > { %v798_v0 = vld [vmem:[%s4249_s1] sm:$0xff]  ;;  %vm804_vm0 = vcmask 261120   ;;  %v799_v1 = vld [vmem:[%s4249_s1 + $0x8] sm:$0xff]  ;;  %v800_v2 = vld [vmem:[%s4249_s1 + $0x10] sm:$0xff] }
  0x22   : > { %805 = vst.msk [vmem:[%s4228_s17] sm:$0xff] %vm804_vm0, %v798_v0  ;;  %v801_v3 = vld [vmem:[%s4249_s1 + $0x18] sm:$0xff]  ;;  %v802_v4 = vld [vmem:[%s4249_s1 + $0x20] sm:$0xff]  ;;  %v803_v5 = vld [vmem:[%s4249_s1 + $0x28] sm:$0xff] }
  0x23   : > { %806 = vst.msk [vmem:[%s4228_s17 + $0x8] sm:$0xff] %vm804_vm0, %v799_v1 }
  0x24   : > { %807 = vst.msk [vmem:[%s4228_s17 + $0x10] sm:$0xff] %vm804_vm0, %v800_v2 }
  0x25   : > { %808 = vst.msk [vmem:[%s4228_s17 + $0x18] sm:$0xff] %vm804_vm0, %v801_v3 }
  0x26   : > { %809 = vst.msk [vmem:[%s4228_s17 + $0x20] sm:$0xff] %vm804_vm0, %v802_v4 }
  0x27   : > { %810 = vst.msk [vmem:[%s4228_s17 + $0x28] sm:$0xff] %vm804_vm0, %v803_v5 }
  0x28 PF: > { %vm819_vm1 = vcmask 261120   ;;  %v3193_v18 = vmov 32.0   ;;  %v2936_v55 = vld [vmem:[%s3346_s18 + $0x8] sm:$0xff]  ;;  %v2935_v61 = vld [vmem:[%s3346_s18] sm:$0xff]  ;;  %s4250_s26 = sld [smem:[#allocation10_spill]]  ;;  %s4254_s24 = scalar_lea.vmem %s4215_s4, %s3328_s19 }
  0x29   : > { %v811_v8 = vld [vmem:[%s4228_s17] sm:$0xff]  ;;  %3005 = vrcp.f32 %v3193_v18  ;;  %1015 = vmatpush.bf16.msra.mxu0 %v2936_v55  ;;  %s4252_s22 = sld [smem:[#allocation11_spill]]  ;;  %s3194_s30 = smov 96  }
  0x2a   : > { %v820_v11 = vsel %vm819_vm1, %v811_v8, 0.0  ;;  %v812_v14 = vld [vmem:[%s4228_s17 + $0x8] sm:$0xff]  ;;  %s3195_s0 = smov 88   ;;  %s3196_s18 = smov 80  }
  0x2b   : > { %v813_v7 = vld [vmem:[%s4228_s17 + $0x10] sm:$0xff]  ;;  %821 = vadd.xlane.f32.xlu0 %v820_v11  ;;  %v823_v17 = vsel %vm819_vm1, %v812_v14, 0.0  ;;  %s3197_s5 = smov 120   ;;  %s3200_s16 = smov 104  }
  0x2c   : > { %v826_v10 = vsel %vm819_vm1, %v813_v7, 0.0  ;;  %v814_v13 = vld [vmem:[%s4228_s17 + $0x18] sm:$0xff]  ;;  %s3201_s29 = smov 64   ;;  %s3204_s21 = smov 40  }
  0x2d   : > { %v815_v6 = vld [vmem:[%s4228_s17 + $0x20] sm:$0xff]  ;;  %827 = vadd.xlane.f32.xlu1 %v826_v10  ;;  %v829_v16 = vsel %vm819_vm1, %v814_v13, 0.0  ;;  %1016 = vmatpush.bf16.msra.mxu0 %v2935_v61  ;;  %s3205_s23 = smov 8   ;;  %p2909_p6 = scmp.ne.s32.totalorder %s3183_s27, 1 }
  0x2e   : > { %v832_v9 = vsel %vm819_vm1, %v815_v6, 0.0  ;;  %v816_v12 = vld [vmem:[%s4228_s17 + $0x28] sm:$0xff]  ;;  %s4251_s20 = scalar_lea.vmem %s4250_s26, %s3328_s19  ;;  %s3198_s26 = smov 112  }
  0x2f   : > { %833 = vadd.xlane.f32.xlu2 %v832_v9  ;;  %v835_v15 = vsel %vm819_vm1, %v816_v12, 0.0  ;;  %v3006_v19 = vpop.eup %3005  ;;  %s4253_s14 = scalar_lea.vmem %s4252_s22, %s3328_s19  ;;  %s3202_s22 = smov 56  }
  0x30   : > { %v839_v20 = vmul.f32 32.0, %v3006_v19  ;;  %vm843_vm2 = vweird.f32 %v3006_v19 }
  0x32   : > { %v840_v21 = vsub.f32 1.0, %v839_v20 }
  0x33   : > { %824 = vadd.xlane.f32.xlu0 %v823_v17 }
  0x34   : > { %v841_v22 = vmul.f32 %v3006_v19, %v840_v21 }
  0x35   : > { %830 = vadd.xlane.f32.xlu1 %v829_v16 }
  0x36   : > { %v842_v23 = vadd.f32 %v3006_v19, %v841_v22 }
  0x37   : > { %836 = vadd.xlane.f32.xlu2 %v835_v15 }
  0x38   : > { %v3445_v24 = vsel %vm843_vm2, %v3006_v19, %v842_v23 }
  0x9e   : > { %v822_v28 = vpop.xlane.xlu0 %821 }
  0x9f   : > { %v845_v29 = vmul.f32 %v3445_v24, %v822_v28 }
  0xa0   : > { %v828_v26 = vpop.xlane.xlu1 %827 }
  0xa1   : > { %v847_v27 = vmul.f32 %v3445_v24, %v828_v26  ;;  %v3451_v31 = vsub.f32 %v811_v8, %v845_v29 }
  0xa2   : > { %v834_v25 = vpop.xlane.xlu2 %833 }
  0xa3   : > { %v3449_v30 = vsub.f32 %v813_v7, %v847_v27  ;;  %v857_v33 = vmul.f32 %v3451_v31, %v3451_v31  ;;  %v849_v41 = vmul.f32 %v3445_v24, %v834_v25 }
  0xa5   : > { %v859_v32 = vmul.f32 %v3449_v30, %v3449_v30  ;;  %v863_v37 = vsel %vm819_vm1, %v857_v33, 0.0  ;;  %v3473_v48 = vsub.f32 %v815_v6, %v849_v41 }
  0xa6   : > { %864 = vadd.xlane.f32.xlu0 %v863_v37  ;;  %v825_v40 = vpop.xlane.xlu0 %824 }
  0xa7   : > { %v869_v34 = vsel %vm819_vm1, %v859_v32, 0.0  ;;  %v846_v42 = vmul.f32 %v3445_v24, %v825_v40  ;;  %v861_v53 = vmul.f32 %v3473_v48, %v3473_v48 }
  0xa8   : > { %870 = vadd.xlane.f32.xlu2 %v869_v34  ;;  %v831_v36 = vpop.xlane.xlu1 %830  ;;  %v2997_v34 = vld [vmem:[%s4251_s20] ss:$0 sm:$0xff]  ;;  %s3199_s20 = smov 72  }
  0xa9   : > { %v848_v39 = vmul.f32 %v3445_v24, %v831_v36  ;;  %v3467_v45 = vsub.f32 %v812_v14, %v846_v42  ;;  %v875_v54 = vsel %vm819_vm1, %v861_v53, 0.0 }
  0xaa   : > { %v837_v35 = vpop.xlane.xlu2 %836 }
  0xab   : > { %v850_v38 = vmul.f32 %v3445_v24, %v837_v35  ;;  %v3465_v44 = vsub.f32 %v814_v13, %v848_v39  ;;  %v858_v49 = vmul.f32 %v3467_v45, %v3467_v45 }
  0xad   : > { %v3463_v43 = vsub.f32 %v816_v12, %v850_v38  ;;  %v860_v47 = vmul.f32 %v3465_v44, %v3465_v44  ;;  %v866_v52 = vsel %vm819_vm1, %v858_v49, 0.0 }
  0xae   : > { %867 = vadd.xlane.f32.xlu1 %v866_v52 }
  0xaf   : > { %v862_v46 = vmul.f32 %v3463_v43, %v3463_v43  ;;  %v872_v51 = vsel %vm819_vm1, %v860_v47, 0.0 }
  0xb0   : > { %873 = vadd.xlane.f32.xlu0 %v872_v51 }
  0xb1   : > { %v878_v50 = vsel %vm819_vm1, %v862_v46, 0.0 }
  0xb2   : > { %879 = vadd.xlane.f32.xlu2 %v878_v50 }
  0xb6   : > { %876 = vadd.xlane.f32.xlu1 %v875_v54 }
 0x119   : > { %v865_v57 = vpop.xlane.xlu0 %864 }
 0x11a   : > { %v881_v58 = vmul.f32 %v865_v57, %v3445_v24 }
 0x11b   : > { %v871_v56 = vpop.xlane.xlu2 %870 }
 0x11c   : > { %v883_v59 = vmul.f32 %v871_v56, %v3445_v24  ;;  %v887_v60 = vadd.f32 1e-05, %v881_v58 }
 0x11e   : > { %3007 = vrsqrt.f32 %v887_v60  ;;  %v3487_v62 = vadd.f32 1e-05, %v883_v59  ;;  %vm899_vm4 = vweird.f32 %v887_v60 }
 0x120   : > { %3009 = vrsqrt.f32 %v3487_v62  ;;  %vm919_vm11 = vweird.f32 %v3487_v62 }
 0x121   : > { %v868_v63 = vpop.xlane.xlu1 %867 }
 0x122   : > { %v882_v1 = vmul.f32 %v868_v63, %v3445_v24 }
 0x123   : > { %v874_v0 = vpop.xlane.xlu0 %873 }
 0x124   : > { %v884_v2 = vmul.f32 %v874_v0, %v3445_v24  ;;  %v3008_v3 = vpop.eup %3007  ;;  %v888_v4 = vadd.f32 1e-05, %v882_v1 }
 0x125   : > { %v894_v6 = vmul.f32 %v3008_v3, %v887_v60  ;;  %v880_v9 = vpop.xlane.xlu2 %879  ;;  %vm900_vm3 = vweird.f32 %v3008_v3 }
 0x126   : > { %v890_v5 = vadd.f32 1e-05, %v884_v2  ;;  %3011 = vrsqrt.f32 %v888_v4  ;;  %v3010_v11 = vpop.eup %3009  ;;  %v886_v15 = vmul.f32 %v880_v9, %v3445_v24  ;;  %vm901_vm5 = vmor %vm899_vm4, %vm900_vm3  ;;  %vm909_vm7 = vweird.f32 %v888_v4 }
 0x127   : > { %v895_v7 = vmul.f32 %v3008_v3, %v894_v6  ;;  %v914_v17 = vmul.f32 %v3010_v11, %v3487_v62  ;;  %vm920_vm12 = vweird.f32 %v3010_v11 }
 0x128   : > { %3013 = vrsqrt.f32 %v890_v5  ;;  %v892_v23 = vadd.f32 1e-05, %v886_v15  ;;  %vm929_vm9 = vweird.f32 %v890_v5  ;;  %vm921_vm14 = vmor %vm919_vm11, %vm920_vm12  ;;  %vm1818_vm11 = vcmask 195712  }
 0x129   : > { %v896_v8 = vmul.f32 0.5, %v895_v7  ;;  %v877_v10 = vpop.xlane.xlu1 %876  ;;  %v915_v26 = vmul.f32 %v3010_v11, %v914_v17  ;;  %vm2083_vm12 = vcmask 261312  }
 0x12a   : > { %v885_v12 = vmul.f32 %v877_v10, %v3445_v24  ;;  %vm949_vm2 = vweird.f32 %v892_v23 }
 0x12b   : > { %v897_v13 = vsub.f32 1.5, %v896_v8  ;;  %v916_v35 = vmul.f32 0.5, %v915_v26 }
 0x12c   : > { %v3012_v14 = vpop.eup %3011  ;;  %v891_v21 = vadd.f32 1e-05, %v885_v12 }
 0x12d   : > { %v898_v18 = vmul.f32 %v3008_v3, %v897_v13  ;;  %v904_v19 = vmul.f32 %v3012_v14, %v888_v4  ;;  %vm910_vm6 = vweird.f32 %v3012_v14  ;;  %v917_v42 = vsub.f32 1.5, %v916_v35 }
 0x12e   : > { %v3014_v16 = vpop.eup %3013  ;;  %3015 = vrsqrt.f32 %v891_v21  ;;  %vm911_vm8 = vmor %vm909_vm7, %vm910_vm6  ;;  %vm939_vm15 = vweird.f32 %v891_v21  ;;  %vm1054_vm6 = vcmask 64512   ;;  %vm1227_vm7 = vcmask 1043456  }
 0x12f   : > { %v924_v20 = vmul.f32 %v3014_v16, %v890_v5  ;;  %v905_v22 = vmul.f32 %v3012_v14, %v904_v19  ;;  %v902_v27 = vsel %vm901_vm5, %v3008_v3, %v898_v18  ;;  %3017 = vrsqrt.f32 %v892_v23 }
 0x130   : > { %v953_v33 = vmul.f32 %v902_v27, %v3451_v31  ;;  %v2998_v31 = vld [vmem:[%s4253_s14] ss:$0 sm:$0xff]  ;;  %vm930_vm10 = vweird.f32 %v3014_v16  ;;  %s3203_s14 = smov 48  }
 0x131   : > { %v925_v25 = vmul.f32 %v3014_v16, %v924_v20  ;;  %v906_v28 = vmul.f32 0.5, %v905_v22  ;;  %vm931_vm13 = vmor %vm929_vm9, %vm930_vm10  ;;  %vm1135_vm9 = vcmask 195584   ;;  %vm1553_vm10 = vcmask 130112  }
 0x132   : > { %v962_v41 = vmul.f32 %v2997_v34, %v953_v33 }
 0x133   : > { %v907_v29 = vsub.f32 1.5, %v906_v28  ;;  %v926_v32 = vmul.f32 0.5, %v925_v25 }
 0x134   : > { %v3016_v39 = vpop.eup %3015  ;;  %v971_v51 = vadd.f32 %v2998_v31, %v962_v41 }
 0x135   : > { %v908_v36 = vmul.f32 %v3012_v14, %v907_v29  ;;  %v927_v38 = vsub.f32 1.5, %v926_v32  ;;  %v3018_v46 = vpop.eup %3017  ;;  %v934_v50 = vmul.f32 %v3016_v39, %v891_v21  ;;  %vm940_vm0 = vweird.f32 %v3016_v39 }
 0x136   : > { %v944_v53 = vmul.f32 %v3018_v46, %v892_v23  ;;  %vm950_vm3 = vweird.f32 %v3018_v46  ;;  %vm941_vm4 = vmor %vm939_vm15, %vm940_vm0 }
 0x137   : > { %v912_v37 = vsel %vm911_vm8, %v3012_v14, %v908_v36  ;;  %v928_v49 = vmul.f32 %v3014_v16, %v927_v38  ;;  %v935_v56 = vmul.f32 %v3016_v39, %v934_v50  ;;  %vm951_vm5 = vmor %vm949_vm2, %vm950_vm3 }
 0x138   : > { %v954_v40 = vmul.f32 %v912_v37, %v3467_v45  ;;  %v918_v45 = vmul.f32 %v3010_v11, %v917_v42  ;;  %v945_v58 = vmul.f32 %v3018_v46, %v944_v53 }
 0x139   : > { %v932_v55 = vsel %vm931_vm13, %v3014_v16, %v928_v49  ;;  %v936_v60 = vmul.f32 0.5, %v935_v56  ;;  %v2999_v16 = vld [vmem:[%s4254_s24] ss:$0 sm:$0xff]  ;;  %s3206_s24 = smov 16  }
 0x13a   : > { %v963_v47 = vmul.f32 %v2997_v34, %v954_v40  ;;  %v922_v57 = vsel %vm921_vm14, %v3010_v11, %v918_v45  ;;  %v956_v59 = vmul.f32 %v932_v55, %v3465_v44  ;;  %v946_v62 = vmul.f32 0.5, %v945_v58 }
 0x13b   : > { %v955_v61 = vmul.f32 %v922_v57, %v3449_v30  ;;  %v937_v0 = vsub.f32 1.5, %v936_v60 }
 0x13c   : > { %v972_v52 = vadd.f32 %v2998_v31, %v963_v47  ;;  %v965_v63 = vmul.f32 %v2997_v34, %v956_v59  ;;  %v947_v2 = vsub.f32 1.5, %v946_v62 }
 0x13d   : > { %v964_v1 = vmul.f32 %v2997_v34, %v955_v61  ;;  %v938_v4 = vmul.f32 %v3016_v39, %v937_v0 }
 0x13e   : > { %v977_v54 = vpack.c.bf16 %v972_v52, %v971_v51  ;;  %v974_v3 = vadd.f32 %v2998_v31, %v965_v63  ;;  %v948_v6 = vmul.f32 %v3018_v46, %v947_v2 }
 0x13f   : > { %v973_v5 = vadd.f32 %v2998_v31, %v964_v1  ;;  %v942_v7 = vsel %vm941_vm4, %v3016_v39, %v938_v4 }
 0x140   : > { %2833 = vmatmul.msk.bf16.vlgmr.msra.gmra.mxu0 %vm819_vm1, %v977_v54  ;;  %v952_v30 = vsel %vm951_vm5, %v3018_v46, %v948_v6  ;;  %v957_v8 = vmul.f32 %v942_v7, %v3473_v48 }
 0x141   : > { %v978_v44 = vpack.c.bf16 %v974_v3, %v973_v5  ;;  %v958_v9 = vmul.f32 %v952_v30, %v3463_v43 }
 0x142   : > { %v966_v10 = vmul.f32 %v2997_v34, %v957_v8 }
 0x143   : > { %v967_v11 = vmul.f32 %v2997_v34, %v958_v9 }
 0x144   : > { %v975_v12 = vadd.f32 %v2998_v31, %v966_v10 }
 0x145   : > { %v976_v13 = vadd.f32 %v2998_v31, %v967_v11 }
 0x147   : > { %v979_v14 = vpack.c.bf16 %v976_v13, %v975_v12 }
 0x150   : > { %2834 = vmatmul.msk.bf16.gmra.mxu0 %vm819_vm1, %v978_v44 }
 0x160   : > { %2835 = vmatmul.msk.bf16.gmra.mxu0 %vm819_vm1, %v979_v14 }
 0x1bd   : > { %v1018_v15 = vpop.f32.mrf.mxu0 }
 0x1be   : > { %v1019_v17 = vadd.f32 %v2999_v16, %v1018_v15 }
 0x1c0   : > { %v1036_v19 = vpack.c.bf16 %v1019_v17, %v1019_v17 }
 0x1c2   : > { %v1045_v21 = vunpack.c.l.b16 %v1036_v19 }
 0x1c5   : > { %v1020_v18 = vpop.f32.mrf.mxu0 }
 0x1c6   : > { %v1021_v20 = vadd.f32 %v2999_v16, %v1020_v18 }
 0x1c8   : > { %v1037_v48 = vpack.c.bf16 %v1021_v20, %v1021_v20 }
 0x1ca   : > { %v1046_v43 = vunpack.c.l.b16 %v1037_v48 }
 0x1cc   : > { %v3520_v22 = vpack.c.b16 %v1046_v43, %v1045_v21 }
 0x1cd   : > { %v1023_v23 = vpop.f32.mrf.mxu0 }
 0x1ce   : > { %v1024_v25 = vadd.f32 %v2999_v16, %v1023_v23  ;;  %1050 = vrot.lane.b32.xlu1 %v3520_v22, %s3194_s30 }
 0x1d0   : > { %v1038_v26 = vpack.c.bf16 %v1024_v25, %v1024_v25 }
 0x1d2   : > { %v1047_v27 = vunpack.c.l.b16 %v1038_v26 }
 0x1d4   : > { %v3523_v28 = vpack.c.b16 %v1047_v27, %v1047_v27 }
 0x1d5   : > { %v1025_v29 = vpop.f32.mrf.mxu0 }
 0x1d6   : > { %1299 = vrot.lane.b32.xlu1 %v3520_v22, %s3195_s0  ;;  %1052 = vrot.lane.b32.xlu0 %v3523_v28, %s3194_s30  ;;  %v1026_v32 = vadd.f32 %v2999_v16, %v1025_v29 }
 0x1d8   : > { %v1039_v34 = vpack.c.bf16 %v1026_v32, %v1026_v32 }
 0x1da   : > { %v1088_v37 = vunpack.c.l.b16 %v1039_v34 }
 0x1dd   : > { %v1028_v33 = vpop.f32.mrf.mxu0 }
 0x1de   : > { %v1029_v35 = vadd.f32 %v2999_v16, %v1028_v33 }
 0x1e0   : > { %v1040_v36 = vpack.c.bf16 %v1029_v35, %v1029_v35 }
 0x1e2   : > { %v1089_v38 = vunpack.c.l.b16 %v1040_v36 }
 0x1e4   : > { %v3528_v39 = vpack.c.b16 %v1089_v38, %v1088_v37 }
 0x1e5   : > { %v1030_v40 = vpop.f32.mrf.mxu0 }
 0x1e6   : > { %v1031_v41 = vadd.f32 %v2999_v16, %v1030_v40  ;;  %1337 = vrot.lane.b32.xlu1 %v3528_v39, %s3195_s0  ;;  %1093 = vrot.lane.b32.xlu0 %v3528_v39, %s3194_s30  ;;  %v1033_v40 = vlaneseq }
 0x1e8   : > { %v1041_v31 = vpack.c.bf16 %v1031_v41, %v1031_v41 }
 0x1ea   : > { %v1090_v42 = vunpack.c.l.b16 %v1041_v31  ;;  %v3617_v31 = vand.u32 127, %v1033_v40 }
 0x1ec   : > { %v3533_v46 = vpack.c.b16 %v1090_v42, %v1090_v42  ;;  %vm1035_vm8 = vcmp.lt.s32.totalorder %v3617_v31, 17 }
 0x1ee   : > { %1095 = vrot.lane.b32.xlu2 %v3533_v46, %s3194_s30  ;;  %1566 = vrot.lane.b32.xlu1 %v3523_v28, %s3196_s18  ;;  %s3207_s30 = smov 24  }
 0x1ef   : > { %1295 = vrot.lane.b32.xlu0 %v3520_v22, %s3197_s5 }
 0x1f6   : > { %1598 = vrot.lane.b32.xlu1 %v3528_v39, %s3198_s26  ;;  %1301 = vrot.lane.b32.xlu2 %v3523_v28, %s3195_s0 }
 0x1f7   : > { %1297 = vrot.lane.b32.xlu0 %v3523_v28, %s3197_s5 }
 0x1fe   : > { %1829 = vrot.lane.b32.xlu1 %v3520_v22, %s3199_s20  ;;  %1333 = vrot.lane.b32.xlu2 %v3528_v39, %s3197_s5 }
 0x1ff   : > { %1564 = vrot.lane.b32.xlu0 %v3520_v22, %s3196_s18 }
 0x206   : > { %1825 = vrot.lane.b32.xlu1 %v3520_v22, %s3200_s16  ;;  %1602 = vrot.lane.b32.xlu2 %v3528_v39, %s3196_s18 }
 0x207   : > { %1560 = vrot.lane.b32.xlu0 %v3520_v22, %s3198_s26 }
 0x20e   : > { %1604 = vrot.lane.b32.xlu1 %v3533_v46, %s3196_s18  ;;  %1339 = vrot.lane.b32.xlu2 %v3533_v46, %s3195_s0  ;;  %s4255_s18 = scalar_lea.vmem %s4217_s6, %s3328_s19 }
 0x20f   : > { %1562 = vrot.lane.b32.xlu0 %v3523_v28, %s3198_s26 }
 0x216   : > { %1827 = vrot.lane.b32.xlu1 %v3523_v28, %s3200_s16  ;;  %1831 = vrot.lane.b32.xlu2 %v3523_v28, %s3199_s20 }
 0x217   : > { %1867 = vrot.lane.b32.xlu0 %v3528_v39, %s3199_s20 }
 0x21e   : > { %1216 = vrot.lane.b32.xlu1 %v3520_v22, %s3201_s29  ;;  %1863 = vrot.lane.b32.xlu2 %v3528_v39, %s3200_s16 }
 0x21f   : > { %1600 = vrot.lane.b32.xlu0 %v3533_v46, %s3198_s26 }
 0x226   : > { %1497 = vrot.lane.b32.xlu1 %v3528_v39, %s3202_s22  ;;  %1335 = vrot.lane.b32.xlu2 %v3533_v46, %s3197_s5 }
 0x227   : > { %1218 = vrot.lane.b32.xlu0 %v3523_v28, %s3201_s29 }
 0x22e   : > { %1257 = vrot.lane.b32.xlu2 %v3528_v39, %s3201_s29 }
 0x22f   : > { %1459 = vrot.lane.b32.xlu0 %v3523_v28, %s3202_s22 }
 0x236   : > { %1722 = vrot.lane.b32.xlu2 %v3520_v22, %s3203_s14 }
 0x237   : > { %1457 = vrot.lane.b32.xlu0 %v3520_v22, %s3202_s22 }
 0x23e   : > { %1869 = vrot.lane.b32.xlu2 %v3533_v46, %s3199_s20  ;;  %s4256_s20 = scalar_lea.vmem %s4221_s10, %s3328_s19 }
 0x23f   : > { %1724 = vrot.lane.b32.xlu0 %v3523_v28, %s3203_s14 }
 0x240   : > { %v1051_v47 = vpop.permute.xlu1 %1050 }
 0x241   : > { %v1062_v55 = vsel %vm1054_vm6, %v1051_v47, 0 }
 0x246   : > { %1259 = vrot.lane.b32.xlu2 %v3533_v46, %s3201_s29  ;;  %s4257_s29 = scalar_lea.vmem %s4223_s12, %s3328_s19 }
 0x247   : > { %1865 = vrot.lane.b32.xlu0 %v3533_v46, %s3200_s16 }
 0x248   : > { %v1096_v49 = vpop.permute.xlu2 %1095  ;;  %v1053_v50 = vpop.permute.xlu0 %1052 }
 0x249   : > { %v1107_v51 = vsel %vm1054_vm6, %v1096_v49, 0  ;;  %v1065_v52 = vsel %vm1054_vm6, %v1053_v50, 0  ;;  %v1300_v45 = vpop.permute.xlu1 %1299 }
 0x24a   : > { %1115 = vmatpush.bf16.xpose.msra.mxu2 %v1107_v51  ;;  %1073 = vmatpush.bf16.xpose.msra.mxu1 %v1065_v52  ;;  %v1310_v60 = vsel %vm1054_vm6, %v1300_v45, 0 }
 0x24e   : > { %1499 = vrot.lane.b32.xlu2 %v3533_v46, %s3202_s22 }
 0x250   : > { %v1302_v53 = vpop.permute.xlu2 %1301 }
 0x251   : > { %v1313_v54 = vsel %vm1054_vm6, %v1302_v53, 0 }
 0x252   : > { %1074 = vmatpush.bf16.xpose.msra.mxu1 %v1062_v55 }
 0x258   : > { %v1338_v56 = vpop.permute.xlu1 %1337  ;;  %v1334_v57 = vpop.permute.xlu2 %1333 }
 0x259   : > { %v1094_v58 = vpop.permute.xlu0 %1093  ;;  %2836 = vmatmul.msk.bf16.vlgmr.msra.gmra.mxu1 %vm1054_vm6, %v3520_v22  ;;  %v1348_v30 = vsel %vm1054_vm6, %v1338_v56, 0 }
 0x25a   : > { %1321 = vmatpush.bf16.xpose.msrb.mxu1 %v1313_v54  ;;  %v1104_v59 = vsel %vm1054_vm6, %v1094_v58, 0 }
 0x25b   : > { %1116 = vmatpush.bf16.xpose.msra.mxu2 %v1104_v59 }
 0x260   : > { %v1567_v61 = vpop.permute.xlu1 %1566  ;;  %v1603_v62 = vpop.permute.xlu2 %1602 }
 0x261   : > { %v1578_v63 = vsel %vm1054_vm6, %v1567_v61, 0  ;;  %v1296_v0 = vpop.permute.xlu0 %1295  ;;  %v1613_v19 = vsel %vm1054_vm6, %v1603_v62, 0 }
 0x262   : > { %1322 = vmatpush.bf16.xpose.msrb.mxu1 %v1310_v60  ;;  %2838 = vmatmul.msk.bf16.vlgmr.msra.gmra.mxu2 %vm1054_vm6, %v3528_v39 }
 0x268   : > { %v1599_v1 = vpop.permute.xlu1 %1598  ;;  %v1340_v2 = vpop.permute.xlu2 %1339 }
 0x269   : > { %v1298_v3 = vpop.permute.xlu0 %1297  ;;  %v1351_v4 = vsel %vm1054_vm6, %v1340_v2, 0  ;;  %2837 = vmatmul.msk.bf16.gmra.mxu1 %vm1054_vm6, %v3523_v28 }
 0x26a   : > { %1586 = vmatpush.bf16.xpose.msra.mxu1 %v1578_v63  ;;  %1359 = vmatpush.bf16.xpose.msrb.mxu2 %v1351_v4 }
 0x270   : > { %v1830_v5 = vpop.permute.xlu1 %1829  ;;  %v1832_v6 = vpop.permute.xlu2 %1831 }
 0x271   : > { %v1565_v44 = vpop.permute.xlu0 %1564  ;;  %v1843_v11 = vsel %vm1054_vm6, %v1832_v6, 0  ;;  %v1840_v16 = vsel %vm1054_vm6, %v1830_v5, 0 }
 0x272   : > { %v1575_v7 = vsel %vm1054_vm6, %v1565_v44, 0  ;;  %2839 = vmatmul.msk.bf16.gmra.mxu2 %vm1054_vm6, %v3533_v46 }
 0x273   : > { %1360 = vmatpush.bf16.xpose.msrb.mxu2 %v1348_v30  ;;  %1587 = vmatpush.bf16.xpose.msra.mxu1 %v1575_v7 }
 0x278   : > { %v1826_v8 = vpop.permute.xlu1 %1825  ;;  %v1864_v9 = vpop.permute.xlu2 %1863 }
 0x279   : > { %v1561_v10 = vpop.permute.xlu0 %1560  ;;  %2844 = vmatmul.msk.bf16.vlgmr.msrb.gmra.mxu1 %vm1054_vm6, %v1296_v0 }
 0x27b   : > { %1851 = vmatpush.bf16.xpose.msrb.mxu1 %v1843_v11 }
 0x280   : > { %v1605_v12 = vpop.permute.xlu1 %1604  ;;  %v1336_v13 = vpop.permute.xlu2 %1335 }
 0x281   : > { %v1616_v14 = vsel %vm1054_vm6, %v1605_v12, 0  ;;  %v1563_v15 = vpop.permute.xlu0 %1562 }
 0x282   : > { %2846 = vmatmul.msk.bf16.vlgmr.msrb.gmra.mxu2 %vm1054_vm6, %v1334_v57 }
 0x283   : > { %1852 = vmatpush.bf16.xpose.msrb.mxu1 %v1840_v16  ;;  %1624 = vmatpush.bf16.xpose.msra.mxu2 %v1616_v14 }
 0x288   : > { %v1258_v17 = vpop.permute.xlu2 %1257  ;;  %v1828_v21 = vpop.permute.xlu1 %1827 }
 0x289   : > { %v1868_v18 = vpop.permute.xlu0 %1867  ;;  %2845 = vmatmul.msk.bf16.gmra.mxu1 %vm1054_vm6, %v1298_v3 }
 0x28a   : > { %v1878_v34 = vsel %vm1054_vm6, %v1868_v18, 0 }
 0x28b   : > { %1625 = vmatpush.bf16.xpose.msra.mxu2 %v1613_v19 }
 0x290   : > { %v1723_v20 = vpop.permute.xlu2 %1722  ;;  %v1217_v27 = vpop.permute.xlu1 %1216 }
 0x291   : > { %v1601_v48 = vpop.permute.xlu0 %1600 }
 0x292   : > { %2847 = vmatmul.msk.bf16.gmra.mxu2 %vm1054_vm6, %v1336_v13 }
 0x298   : > { %v1870_v43 = vpop.permute.xlu2 %1869 }
 0x299   : > { %v1881_v23 = vsel %vm1054_vm6, %v1870_v43, 0  ;;  %v1219_v25 = vpop.permute.xlu0 %1218  ;;  %2852 = vmatmul.msk.bf16.vlgmr.msra.gmra.mxu1 %vm1054_vm6, %v1561_v10 }
 0x29a   : > { %v1229_v26 = vsel %vm1227_vm7, %v1219_v25, 0  ;;  %1889 = vmatpush.bf16.xpose.msrb.mxu2 %v1881_v23 }
 0x29b   : > { %1237 = vmatpush.bf16.msra.mxu3 %v1229_v26 }
 0x29f   : > { %1238 = vmatpush.bf16.msra.mxu3 %v1217_v27 }
 0x2a0   : > { %v1260_v29 = vpop.permute.xlu2 %1259 }
 0x2a1   : > { %v1460_v32 = vpop.permute.xlu0 %1459  ;;  %v1269_v33 = vsel %vm1227_vm7, %v1260_v29, 0 }
 0x2a2   : > { %2854 = vmatmul.msk.bf16.vlgmr.msra.gmra.mxu2 %vm1054_vm6, %v1599_v1  ;;  %v3605_v35 = vsel %vm1227_vm7, %v1460_v32, 0 }
 0x2a3   : > { %1277 = vmatpush.bf16.msrb.mxu3 %v1269_v33  ;;  %1477 = vmatpush.bf16.msrb.mxu0 %v3605_v35 }
 0x2a4   : > { %1890 = vmatpush.bf16.xpose.msrb.mxu2 %v1878_v34 }
 0x2a7   : > { %1278 = vmatpush.bf16.msrb.mxu3 %v1258_v17 }
 0x2a9   : > { %v3608_v36 = vpop.permute.xlu0 %1457  ;;  %2853 = vmatmul.msk.bf16.gmra.mxu1 %vm1054_vm6, %v1563_v15 }
 0x2aa   : > { %1478 = vmatpush.bf16.msrb.mxu0 %v3608_v36 }
 0x2b1   : > { %v1725_v37 = vpop.permute.xlu0 %1724 }
 0x2b2   : > { %v1734_v38 = vsel %vm1227_vm7, %v1725_v37, 0  ;;  %2855 = vmatmul.msk.bf16.gmra.mxu2 %vm1054_vm6, %v1601_v48 }
 0x2b3   : > { %1742 = vmatpush.bf16.msra.mxu0 %v1734_v38 }
 0x2b7   : > { %1743 = vmatpush.bf16.msra.mxu0 %v1723_v20 }
 0x2b9   : > { %2860 = vmatmul.msk.bf16.vlgmr.msrb.gmra.mxu1 %vm1054_vm6, %v1826_v8  ;;  %v1866_v41 = vpop.permute.xlu0 %1865 }
 0x2c2   : > { %2862 = vmatmul.msk.bf16.vlgmr.msrb.gmra.mxu2 %vm1054_vm6, %v1864_v9 }
 0x2c9   : > { %2861 = vmatmul.msk.bf16.gmra.mxu1 %vm1054_vm6, %v1828_v21 }
 0x2d2   : > { %2863 = vmatmul.msk.bf16.gmra.mxu2 %vm1054_vm6, %v1866_v41 }
 0x2d6   : > { %v1076_v42 = vpop.f32.mrf.mxu1 }
 0x2d7   : > { %v3623_v47 = vsel %vm1035_vm8, %v1076_v42, -1e+30 }
 0x2d8   : > { %v1136_v49 = vsel %vm1135_vm9, %v3623_v47, -inf }
 0x2d9   : > { %1137 = vmax.xlane.f32.xlu2 %v1136_v49 }
 0x2de   : > { %v1078_v50 = vpop.f32.mrf.mxu1 }
 0x2df   : > { %v3629_v51 = vsel %vm1035_vm8, %v1078_v50, -1e+30 }
 0x2e0   : > { %v1139_v52 = vsel %vm1135_vm9, %v3629_v51, -inf }
 0x2e1   : > { %1140 = vmax.xlane.f32.xlu1 %v1139_v52 }
 0x2e5   : > { %v1118_v45 = vpop.f32.mrf.mxu2 }
 0x2e6   : > { %v3635_v53 = vsel %vm1035_vm8, %v1118_v45, -1e+30  ;;  %v1081_v54 = vpop.f32.mrf.mxu1 }
 0x2e7   : > { %v1145_v55 = vsel %vm1135_vm9, %v3635_v53, -inf  ;;  %v3641_v56 = vsel %vm1035_vm8, %v1081_v54, -1e+30 }
 0x2e8   : > { %1146 = vmax.xlane.f32.xlu2 %v1145_v55  ;;  %v1142_v57 = vsel %vm1135_vm9, %v3641_v56, -inf }
 0x2e9   : > { %1143 = vmax.xlane.f32.xlu0 %v1142_v57 }
 0x2ed   : > { %v1120_v58 = vpop.f32.mrf.mxu2 }
 0x2ee   : > { %v3647_v59 = vsel %vm1035_vm8, %v1120_v58, -1e+30  ;;  %v1083_v60 = vpop.f32.mrf.mxu1  ;;  %v3735_v58 = vpop.permute.xlu2 %1499 }
 0x2ef   : > { %v1148_v61 = vsel %vm1135_vm9, %v3647_v59, -inf }
 0x2f0   : > { %1149 = vmax.xlane.f32.xlu1 %v1148_v61 }
 0x2f5   : > { %v1123_v62 = vpop.f32.mrf.mxu2 }
 0x2f6   : > { %v1324_v63 = vpop.f32.mrf.mxu1  ;;  %v3665_v44 = vsel %vm1035_vm8, %v1123_v62, -1e+30 }
 0x2f7   : > { %v3653_v0 = vsel %vm1035_vm8, %v1324_v63, -1e+30  ;;  %v1151_v8 = vsel %vm1135_vm9, %v3665_v44, -inf }
 0x2f8   : > { %v1377_v1 = vsel %vm1135_vm9, %v3653_v0, -inf }
 0x2f9   : > { %1378 = vmax.xlane.f32.xlu2 %v1377_v1  ;;  %v3743_v1 = vpop.permute.xlu1 %1497 }
 0x2fd   : > { %v1125_v2 = vpop.f32.mrf.mxu2 }
 0x2fe   : > { %v1326_v3 = vpop.f32.mrf.mxu1 }
 0x2ff   : > { %v3659_v4 = vsel %vm1035_vm8, %v1326_v3, -1e+30 }
 0x300   : > { %v1380_v5 = vsel %vm1135_vm9, %v3659_v4, -inf }
 0x301   : > { %1381 = vmax.xlane.f32.xlu0 %v1380_v5 }
 0x305   : > { %v1362_v6 = vpop.f32.mrf.mxu2 }
 0x306   : > { %v1329_v7 = vpop.f32.mrf.mxu1  ;;  %v3677_v11 = vsel %vm1035_vm8, %v1362_v6, -1e+30 }
 0x307   : > { %v3669_v30 = vsel %vm1035_vm8, %v1329_v7, -1e+30  ;;  %v1386_v15 = vsel %vm1135_vm9, %v3677_v11, -inf }
 0x308   : > { %v1383_v9 = vsel %vm1135_vm9, %v3669_v30, -inf }
 0x309   : > { %1152 = vmax.xlane.f32.xlu0 %v1151_v8  ;;  %1384 = vmax.xlane.f32.xlu2 %v1383_v9 }
 0x30d   : > { %v1364_v10 = vpop.f32.mrf.mxu2 }
 0x30e   : > { %v3681_v12 = vsel %vm1035_vm8, %v1364_v10, -1e+30  ;;  %v1331_v13 = vpop.f32.mrf.mxu1 }
 0x30f   : > { %v1389_v14 = vsel %vm1135_vm9, %v3681_v12, -inf }
 0x310   : > { %1390 = vmax.xlane.f32.xlu1 %v1389_v14 }
 0x311   : > { %1387 = vmax.xlane.f32.xlu2 %v1386_v15 }
 0x315   : > { %v1367_v16 = vpop.f32.mrf.mxu2 }
 0x316   : > { %v3689_v17 = vsel %vm1035_vm8, %v1367_v16, -1e+30  ;;  %v1589_v18 = vpop.f32.mrf.mxu1 }
 0x317   : > { %v1392_v19 = vsel %vm1135_vm9, %v3689_v17, -inf  ;;  %v3695_v20 = vsel %vm1035_vm8, %v1589_v18, -1e+30 }
 0x318   : > { %1393 = vmax.xlane.f32.xlu1 %v1392_v19  ;;  %v1642_v48 = vsel %vm1135_vm9, %v3695_v20, -inf }
 0x319   : > { %1643 = vmax.xlane.f32.xlu0 %v1642_v48 }
 0x31d   : > { %v1369_v21 = vpop.f32.mrf.mxu2 }
 0x31e   : > { %v1591_v43 = vpop.f32.mrf.mxu1 }
 0x31f   : > { %v3701_v23 = vsel %vm1035_vm8, %v1591_v43, -1e+30 }
 0x320   : > { %v1645_v25 = vsel %vm1135_vm9, %v3701_v23, -inf }
 0x321   : > { %1646 = vmax.xlane.f32.xlu0 %v1645_v25 }
 0x325   : > { %v1627_v26 = vpop.f32.mrf.mxu2 }
 0x326   : > { %v3707_v27 = vsel %vm1035_vm8, %v1627_v26, -1e+30  ;;  %v1594_v29 = vpop.f32.mrf.mxu1 }
 0x327   : > { %v1651_v32 = vsel %vm1135_vm9, %v3707_v27, -inf  ;;  %v3713_v33 = vsel %vm1035_vm8, %v1594_v29, -1e+30 }
 0x328   : > { %1652 = vmax.xlane.f32.xlu2 %v1651_v32  ;;  %v1648_v34 = vsel %vm1135_vm9, %v3713_v33, -inf }
 0x329   : > { %1649 = vmax.xlane.f32.xlu1 %v1648_v34 }
 0x32d   : > { %v1629_v37 = vpop.f32.mrf.mxu2 }
 0x32e   : > { %v3719_v38 = vsel %vm1035_vm8, %v1629_v37, -1e+30  ;;  %v1596_v40 = vpop.f32.mrf.mxu1 }
 0x32f   : > { %v1654_v41 = vsel %vm1135_vm9, %v3719_v38, -inf }
 0x330   : > { %1655 = vmax.xlane.f32.xlu0 %v1654_v41 }
 0x335   : > { %v1632_v42 = vpop.f32.mrf.mxu2 }
 0x336   : > { %v1854_v49 = vpop.f32.mrf.mxu1  ;;  %v3739_v61 = vsel %vm1035_vm8, %v1632_v42, -1e+30 }
 0x337   : > { %v3725_v50 = vsel %vm1035_vm8, %v1854_v49, -1e+30  ;;  %v1657_v63 = vsel %vm1135_vm9, %v3739_v61, -inf }
 0x338   : > { %v1907_v52 = vsel %vm1135_vm9, %v3725_v50, -inf }
 0x339   : > { %1908 = vmax.xlane.f32.xlu1 %v1907_v52 }
 0x33d   : > { %v1634_v45 = vpop.f32.mrf.mxu2 }
 0x33e   : > { %v1856_v54 = vpop.f32.mrf.mxu1 }
 0x33f   : > { %v3731_v55 = vsel %vm1035_vm8, %v1856_v54, -1e+30 }
 0x340   : > { %v1910_v57 = vsel %vm1135_vm9, %v3731_v55, -inf }
 0x341   : > { %1911 = vmax.xlane.f32.xlu1 %v1910_v57 }
 0x345   : > { %v1892_v60 = vpop.f32.mrf.mxu2 }
 0x346   : > { %v1859_v62 = vpop.f32.mrf.mxu1  ;;  %v3754_v14 = vsel %vm1035_vm8, %v1892_v60, -1e+30 }
 0x347   : > { %v3747_v5 = vsel %vm1035_vm8, %v1859_v62, -1e+30  ;;  %v1916_v48 = vsel %vm1135_vm9, %v3754_v14, -inf }
 0x348   : > { %v1913_v9 = vsel %vm1135_vm9, %v3747_v5, -inf }
 0x349   : > { %1658 = vmax.xlane.f32.xlu1 %v1657_v63 }
 0x34c   : > { %v1138_v2 = vpop.xlane.xlu2 %1137 }
 0x34d   : > { %v1894_v3 = vpop.f32.mrf.mxu2  ;;  %v1154_v6 = vsub.f32 %v3623_v47, %v1138_v2 }
 0x34e   : > { %v1861_v7 = vpop.f32.mrf.mxu1  ;;  %v3771_v29 = vsel %vm1035_vm8, %v1894_v3, -1e+30 }
 0x34f   : > { %v1160_v8 = vmul.f32 1.442695, %v1154_v6  ;;  %v1919_v37 = vsel %vm1135_vm9, %v3771_v29, -inf }
 0x351   : > { %3019 = vpow2.f32 %v1160_v8  ;;  %1914 = vmax.xlane.f32.xlu1 %v1913_v9 }
 0x354   : > { %v1141_v10 = vpop.xlane.xlu1 %1140 }
 0x355   : > { %v1897_v13 = vpop.f32.mrf.mxu2  ;;  %v1155_v18 = vsub.f32 %v3629_v51, %v1141_v10 }
 0x356   : > { %v3758_v15 = vsel %vm1035_vm8, %v1897_v13, -1e+30 }
 0x357   : > { %v1922_v47 = vsel %vm1135_vm9, %v3758_v15, -inf  ;;  %v3762_v16 = vpop.eup %3019  ;;  %v1162_v21 = vmul.f32 1.442695, %v1155_v18 }
 0x358   : > { %1923 = vmax.xlane.f32.xlu0 %v1922_v47  ;;  %v1172_v19 = vsel %vm1135_vm9, %v3762_v16, 0.0 }
 0x359   : > { %1173 = vadd.xlane.f32.xlu2 %v1172_v19  ;;  %1917 = vmax.xlane.f32.xlu1 %v1916_v48  ;;  %3021 = vpow2.f32 %v1162_v21 }
 0x35b   : > { %v1147_v43 = vpop.xlane.xlu2 %1146 }
 0x35c   : > { %v1144_v26 = vpop.xlane.xlu0 %1143  ;;  %v1157_v51 = vsub.f32 %v3635_v53, %v1147_v43 }
 0x35d   : > { %v1899_v25 = vpop.f32.mrf.mxu2  ;;  %v1156_v32 = vsub.f32 %v3641_v56, %v1144_v26 }
 0x35e   : > { %v1166_v40 = vmul.f32 1.442695, %v1157_v51 }
 0x35f   : > { %v1164_v34 = vmul.f32 1.442695, %v1156_v32  ;;  %v3777_v42 = vpop.eup %3021 }
 0x360   : > { %v1175_v56 = vsel %vm1135_vm9, %v3777_v42, 0.0 }
 0x361   : > { %3023 = vpow2.f32 %v1164_v34  ;;  %1920 = vmax.xlane.f32.xlu1 %v1919_v37 }
 0x362   : > { %3025 = vpow2.f32 %v1166_v40 }
 0x363   : > { %v1150_v41 = vpop.xlane.xlu1 %1149 }
 0x364   : > { %v1158_v31 = vsub.f32 %v3647_v59, %v1150_v41 }
 0x366   : > { %v1168_v52 = vmul.f32 1.442695, %v1158_v31 }
 0x367   : > { %v3779_v49 = vpop.eup %3023 }
 0x368   : > { %v1178_v53 = vsel %vm1135_vm9, %v3779_v49, 0.0  ;;  %v3786_v54 = vpop.eup %3025  ;;  %3027 = vpow2.f32 %v1168_v52 }
 0x369   : > { %1176 = vadd.xlane.f32.xlu1 %v1175_v56  ;;  %1179 = vadd.xlane.f32.xlu2 %v1178_v53  ;;  %v1181_v62 = vsel %vm1135_vm9, %v3786_v54, 0.0 }
 0x36c   : > { %v1379_v45 = vpop.xlane.xlu2 %1378 }
 0x36d   : > { %v1395_v57 = vsub.f32 %v3653_v0, %v1379_v45 }
 0x36e   : > { %v3791_v63 = vpop.eup %3027 }
 0x36f   : > { %v1401_v60 = vmul.f32 1.442695, %v1395_v57  ;;  %v1184_v0 = vsel %vm1135_vm9, %v3791_v63, 0.0 }
 0x371   : > { %3029 = vpow2.f32 %v1401_v60  ;;  %1182 = vadd.xlane.f32.xlu2 %v1181_v62 }
 0x374   : > { %v1382_v59 = vpop.xlane.xlu0 %1381 }
 0x375   : > { %v1396_v2 = vsub.f32 %v3659_v4, %v1382_v59 }
 0x377   : > { %v3794_v3 = vpop.eup %3029  ;;  %v1403_v6 = vmul.f32 1.442695, %v1396_v2 }
 0x378   : > { %v1413_v7 = vsel %vm1135_vm9, %v3794_v3, 0.0 }
 0x379   : > { %3031 = vpow2.f32 %v1403_v6  ;;  %1414 = vadd.xlane.f32.xlu1 %v1413_v7  ;;  %1185 = vadd.xlane.f32.xlu2 %v1184_v0 }
 0x37c   : > { %v1385_v8 = vpop.xlane.xlu2 %1384  ;;  %v1153_v9 = vpop.xlane.xlu0 %1152 }
 0x37d   : > { %v1397_v10 = vsub.f32 %v3669_v30, %v1385_v8  ;;  %v1159_v13 = vsub.f32 %v3665_v44, %v1153_v9 }
 0x37f   : > { %v3802_v47 = vpop.eup %3031  ;;  %v1405_v4 = vmul.f32 1.442695, %v1397_v10  ;;  %v1170_v18 = vmul.f32 1.442695, %v1159_v13 }
 0x380   : > { %v1416_v19 = vsel %vm1135_vm9, %v3802_v47, 0.0 }
 0x381   : > { %3033 = vpow2.f32 %v1405_v4  ;;  %1417 = vadd.xlane.f32.xlu0 %v1416_v19 }
 0x382   : > { %3035 = vpow2.f32 %v1170_v18 }
 0x383   : > { %v1391_v30 = vpop.xlane.xlu1 %1390 }
 0x384   : > { %v1388_v32 = vpop.xlane.xlu2 %1387  ;;  %v1399_v60 = vsub.f32 %v3681_v12, %v1391_v30 }
 0x385   : > { %v1398_v51 = vsub.f32 %v3677_v11, %v1388_v32 }
 0x386   : > { %v1409_v6 = vmul.f32 1.442695, %v1399_v60 }
 0x387   : > { %v3806_v48 = vpop.eup %3033  ;;  %v1407_v37 = vmul.f32 1.442695, %v1398_v51 }
 0x388   : > { %v3808_v21 = vpop.eup %3035  ;;  %v1419_v43 = vsel %vm1135_vm9, %v3806_v48, 0.0 }
 0x389   : > { %1420 = vadd.xlane.f32.xlu1 %v1419_v43  ;;  %v1187_v44 = vsel %vm1135_vm9, %v3808_v21, 0.0  ;;  %3037 = vpow2.f32 %v1407_v37 }
 0x38a   : > { %1188 = vadd.xlane.f32.xlu0 %v1187_v44 }
 0x38b   : > { %v1394_v25 = vpop.xlane.xlu1 %1393 }
 0x38c   : > { %v1644_v34 = vpop.xlane.xlu0 %1643  ;;  %v1400_v7 = vsub.f32 %v3689_v17, %v1394_v25 }
 0x38d   : > { %v1660_v41 = vsub.f32 %v3695_v20, %v1644_v34 }
 0x38e   : > { %v1411_v0 = vmul.f32 1.442695, %v1400_v7 }
 0x38f   : > { %v3822_v52 = vpop.eup %3037 }
 0x390   : > { %v1422_v11 = vsel %vm1135_vm9, %v3822_v52, 0.0 }
 0x391   : > { %1989 = vrot.lane.b32.xlu2 %v3523_v28, %s3204_s21  ;;  %v1666_v28 = vmul.f32 1.442695, %v1660_v41 }
 0x393   : > { %3039 = vpow2.f32 %v1666_v28 }
 0x394   : > { %v1647_v31 = vpop.xlane.xlu0 %1646 }
 0x395   : > { %v1661_v45 = vsub.f32 %v3701_v23, %v1647_v31 }
 0x397   : > { %v1668_v62 = vmul.f32 1.442695, %v1661_v45 }
 0x399   : > { %v3829_v2 = vpop.eup %3039  ;;  %3041 = vpow2.f32 %v1668_v62 }
 0x39b   : > { %v1653_v53 = vpop.xlane.xlu2 %1652 }
 0x39c   : > { %v1650_v26 = vpop.xlane.xlu1 %1649  ;;  %v1663_v57 = vsub.f32 %v3707_v27, %v1653_v53  ;;  %v1678_v27 = vsel %vm1135_vm9, %v3829_v2, 0.0 }
 0x39d   : > { %v1662_v12 = vsub.f32 %v3713_v33, %v1650_v26 }
 0x39e   : > { %1762 = vrot.lane.b32.xlu0 %v3528_v39, %s3203_s14  ;;  %v1672_v59 = vmul.f32 1.442695, %v1663_v57 }
 0x39f   : > { %v3836_v8 = vpop.eup %3041  ;;  %v1670_v17 = vmul.f32 1.442695, %v1662_v12 }
 0x3a0   : > { %3043 = vpow2.f32 %v1672_v59 }
 0x3a1   : > { %3045 = vpow2.f32 %v1409_v6 }
 0x3a2   : > { %1764 = vrot.lane.b32.xlu1 %v3533_v46, %s3203_s14  ;;  %3047 = vpow2.f32 %v1411_v0 }
 0x3a3   : > { %v1656_v51 = vpop.xlane.xlu0 %1655 }
 0x3a6   : > { %v3838_v13 = vpop.eup %3043 }
 0x3a7   : > { %v3843_v18 = vpop.eup %3045  ;;  %v1687_v33 = vsel %vm1135_vm9, %v3838_v13, 0.0 }
 0x3a8   : > { %v1425_v44 = vsel %vm1135_vm9, %v3843_v18, 0.0  ;;  %v3850_v30 = vpop.eup %3047 }
 0x3a9   : > { %v1428_v34 = vsel %vm1135_vm9, %v3850_v30, 0.0 }
 0x3ac   : > { %v1909_v40 = vpop.xlane.xlu1 %1908 }
 0x3ad   : > { %v1925_v19 = vsub.f32 %v3725_v50, %v1909_v40  ;;  %v1664_v40 = vsub.f32 %v3719_v38, %v1656_v51 }
 0x3af   : > { %v1931_v26 = vmul.f32 1.442695, %v1925_v19  ;;  %v1674_v53 = vmul.f32 1.442695, %v1664_v40 }
 0x3b4   : > { %v1912_v56 = vpop.xlane.xlu1 %1911 }
 0x3b5   : > { %v1926_v4 = vsub.f32 %v3731_v55, %v1912_v56 }
 0x3b7   : > { %v1933_v43 = vmul.f32 1.442695, %v1926_v4 }
 0x3ba   : > { %1423 = vadd.xlane.f32.xlu2 %v1422_v11 }
 0x3bc   : > { %v1659_v20 = vpop.xlane.xlu1 %1658 }
 0x3bd   : > { %v1665_v23 = vsub.f32 %v3739_v61, %v1659_v20  ;;  %v1681_v61 = vsel %vm1135_vm9, %v3836_v8, 0.0 }
 0x3bf   : > { %v1676_v9 = vmul.f32 1.442695, %v1665_v23 }
 0x3c1   : > { %3049 = vpow2.f32 %v1676_v9 }
 0x3c2   : > { %1679 = vadd.xlane.f32.xlu2 %v1678_v27  ;;  %3051 = vpow2.f32 %v1670_v17 }
 0x3c3   : > { %3053 = vpow2.f32 %v1933_v43 }
 0x3c4   : > { %v1915_v10 = vpop.xlane.xlu1 %1914  ;;  %3055 = vpow2.f32 %v1931_v26 }
 0x3c5   : > { %v1927_v32 = vsub.f32 %v3747_v5, %v1915_v10 }
 0x3c7   : > { %v3852_v25 = vpop.eup %3049  ;;  %v1935_v41 = vmul.f32 1.442695, %v1927_v32 }
 0x3c8   : > { %1682 = vadd.xlane.f32.xlu0 %v1681_v61  ;;  %v3857_v50 = vpop.eup %3051  ;;  %v1693_v37 = vsel %vm1135_vm9, %v3852_v25, 0.0 }
 0x3c9   : > { %v1684_v31 = vsel %vm1135_vm9, %v3857_v50, 0.0  ;;  %v3864_v28 = vpop.eup %3053  ;;  %3057 = vpow2.f32 %v1935_v41 }
 0x3ca   : > { %1688 = vadd.xlane.f32.xlu2 %v1687_v33  ;;  %v1946_v45 = vsel %vm1135_vm9, %v3864_v28, 0.0  ;;  %v3870_v57 = vpop.eup %3055 }
 0x3cb   : > { %v1943_v11 = vsel %vm1135_vm9, %v3870_v57, 0.0 }
 0x3cc   : > { %v1918_v55 = vpop.xlane.xlu1 %1917  ;;  %1426 = vadd.xlane.f32.xlu1 %v1425_v44  ;;  %v1174_v5 = vpop.xlane.xlu2 %1173 }
 0x3cd   : > { %3059 = vrcp.f32 %v1174_v5  ;;  %v1928_v38 = vsub.f32 %v3754_v14, %v1918_v55  ;;  %v1924_v44 = vpop.xlane.xlu0 %1923 }
 0x3ce   : > { %3061 = vpow2.f32 %v1674_v53 }
 0x3cf   : > { %v3875_v60 = vpop.eup %3057  ;;  %v1937_v6 = vmul.f32 1.442695, %v1928_v38 }
 0x3d0   : > { %1429 = vadd.xlane.f32.xlu0 %v1428_v34  ;;  %v1949_v7 = vsel %vm1135_vm9, %v3875_v60, 0.0 }
 0x3d2   : > { %1694 = vadd.xlane.f32.xlu2 %v1693_v37 }
 0x3d3   : > { %v3060_v59 = vpop.eup %3059 }
 0x3d4   : > { %1685 = vadd.xlane.f32.xlu1 %v1684_v31  ;;  %v3866_v56 = vpop.xlane.xlu1 %1920  ;;  %v3879_v23 = vpop.eup %3061  ;;  %v1196_v27 = vmul.f32 %v3060_v59, %v3762_v16 }
 0x3d5   : > { %v1690_v0 = vsel %vm1135_vm9, %v3879_v23, 0.0 }
 0x3d6   : > { %v1202_v9 = vpack.c.bf16 %v1196_v27, %v1196_v27 }
 0x3d8   : > { %1947 = vadd.xlane.f32.xlu0 %v1946_v45  ;;  %v1211_v61 = vunpack.c.l.b16 %v1202_v9 }
 0x3dc   : > { %1944 = vadd.xlane.f32.xlu1 %v1943_v11  ;;  %v1177_v62 = vpop.xlane.xlu1 %1176  ;;  %v1180_v20 = vpop.xlane.xlu2 %1179  ;;  %v1929_v11 = vsub.f32 %v3771_v29, %v3866_v56  ;;  %v1509_v56 = vsel %vm1227_vm7, %v3735_v58, 0 }
 0x3dd   : > { %3063 = vrcp.f32 %v1177_v62 }
 0x3de   : > { %3065 = vpow2.f32 %v1937_v6 }
 0x3df   : > { %3067 = vrcp.f32 %v1180_v20 }
 0x3e0   : > { %1950 = vadd.xlane.f32.xlu0 %v1949_v7  ;;  %v1939_v7 = vmul.f32 1.442695, %v1929_v11 }
 0x3e3   : > { %v3064_v14 = vpop.eup %3063 }
 0x3e4   : > { %1691 = vadd.xlane.f32.xlu1 %v1690_v0  ;;  %v1197_v12 = vmul.f32 %v3064_v14, %v3777_v42  ;;  %v1183_v17 = vpop.xlane.xlu2 %1182  ;;  %v3885_v4 = vpop.eup %3065  ;;  %v1930_v14 = vsub.f32 %v3758_v15, %v1924_v44 }
 0x3e5   : > { %v3068_v19 = vpop.eup %3067  ;;  %v1952_v43 = vsel %vm1135_vm9, %v3885_v4, 0.0 }
 0x3e6   : > { %v1203_v10 = vpack.c.bf16 %v1197_v12, %v1197_v12  ;;  %v1198_v42 = vmul.f32 %v3068_v19, %v3779_v49  ;;  %v1941_v9 = vmul.f32 1.442695, %v1930_v14 }
 0x3e8   : > { %v1212_v33 = vunpack.c.l.b16 %v1203_v10  ;;  %v1204_v32 = vpack.c.bf16 %v1198_v42, %v1198_v42 }
 0x3ea   : > { %1987 = vrot.lane.b32.xlu2 %v3520_v22, %s3204_s21  ;;  %v1214_v16 = vpack.c.b16 %v1212_v33, %v1211_v61  ;;  %v1213_v34 = vunpack.c.l.b16 %v1204_v32 }
 0x3ec   : > { %v1415_v55 = vpop.xlane.xlu1 %1414  ;;  %2840 = vmatmul.msk.bf16.vlgmr.msra.gmra.mxu3 %vm1135_vm9, %v1214_v16  ;;  %1953 = vadd.xlane.f32.xlu1 %v1952_v43  ;;  %v1186_v26 = vpop.xlane.xlu2 %1185 }
 0x3ed   : > { %2948 = vmatpush.bf16.msra.mxu3 %v3605_v35  ;;  %3069 = vrcp.f32 %v1415_v55  ;;  %v1215_v35 = vpack.c.b16 %v1213_v34, %v1213_v34 }
 0x3ee   : > { %3071 = vrcp.f32 %v1186_v26 }
 0x3f1   : > { %2949 = vmatpush.bf16.msra.mxu3 %v3608_v36 }
 0x3f3   : > { %v3070_v51 = vpop.eup %3069 }
 0x3f4   : > { %2027 = vrot.lane.b32.xlu0 %v3528_v39, %s3204_s21  ;;  %v1418_v22 = vpop.xlane.xlu0 %1417  ;;  %v1437_v37 = vmul.f32 %v3070_v51, %v3794_v3  ;;  %v3072_v40 = vpop.eup %3071 }
 0x3f5   : > { %3073 = vrcp.f32 %v1418_v22  ;;  %v1200_v5 = vmul.f32 %v3072_v40, %v3791_v63  ;;  %v1990_v3 = vpop.permute.xlu2 %1989 }
 0x3f6   : > { %3075 = vrcp.f32 %v1183_v17  ;;  %v1443_v49 = vpack.c.bf16 %v1437_v37, %v1437_v37 }
 0x3f7   : > { %v1206_v62 = vpack.c.bf16 %v1200_v5, %v1200_v5 }
 0x3f8   : > { %v1452_v45 = vunpack.c.l.b16 %v1443_v49 }
 0x3fb   : > { %v3074_v41 = vpop.eup %3073 }
 0x3fc   : > { %v1438_v31 = vmul.f32 %v3074_v41, %v3802_v47  ;;  %2841 = vmatmul.msk.bf16.gmra.mxu3 %vm1135_vm9, %v1215_v35  ;;  %v3076_v36 = vpop.eup %3075  ;;  %v1999_v47 = vsel %vm1227_vm7, %v1990_v3, 0 }
 0x3fd   : > { %v1199_v39 = vmul.f32 %v3076_v36, %v3786_v54  ;;  %v1189_v59 = vpop.xlane.xlu0 %1188  ;;  %v1253_v54 = vunpack.c.l.b16 %v1206_v62 }
 0x3fe   : > { %v1444_v53 = vpack.c.bf16 %v1438_v31, %v1438_v31  ;;  %3077 = vrcp.f32 %v1189_v59 }
 0x3ff   : > { %v1205_v6 = vpack.c.bf16 %v1199_v39, %v1199_v39  ;;  %3079 = vpow2.f32 %v1939_v7 }
 0x400   : > { %v1453_v38 = vunpack.c.l.b16 %v1444_v53  ;;  %3081 = vpow2.f32 %v1941_v9 }
 0x401   : > { %v1252_v63 = vunpack.c.l.b16 %v1205_v6 }
 0x402   : > { %v1455_v20 = vpack.c.b16 %v1453_v38, %v1452_v45 }
 0x403   : > { %v1255_v27 = vpack.c.b16 %v1253_v54, %v1252_v63 }
 0x404   : > { %2848 = vmatmul.msk.bf16.vlgmr.msrb.gmra.mxu0 %vm1135_vm9, %v1455_v20  ;;  %v3078_v29 = vpop.eup %3077 }
 0x405   : > { %2007 = vmatpush.bf16.msrb.mxu0 %v1999_v47  ;;  %2029 = vrot.lane.b32.xlu1 %v3533_v46, %s3204_s21  ;;  %v1201_v0 = vmul.f32 %v3078_v29, %v3808_v21  ;;  %v3913_v12 = vpop.eup %3079  ;;  %v1421_v46 = vpop.xlane.xlu1 %1420  ;;  %s4259_s21 = sld [smem:[#allocation15_spill]] (!%p2909_p6) }
 0x406   : > { %v1955_v10 = vsel %vm1135_vm9, %v3913_v12, 0.0  ;;  %3083 = vrcp.f32 %v1421_v46  ;;  %v3918_v15 = vpop.eup %3081 }
 0x407   : > { %v1207_v17 = vpack.c.bf16 %v1201_v0, %v1201_v0  ;;  %v1958_v21 = vsel %vm1135_vm9, %v3918_v15, 0.0 }
 0x409   : > { %v1254_v58 = vunpack.c.l.b16 %v1207_v17 }
 0x40b   : > { %v1256_v61 = vpack.c.b16 %v1254_v58, %v1254_v58 }
 0x40c   : > { %2842 = vmatmul.msk.bf16.vlgmr.msrb.gmra.mxu3 %vm1135_vm9, %v1255_v27  ;;  %v3084_v33 = vpop.eup %3083 }
 0x40d   : > { %1517 = vmatpush.bf16.msrb.mxu3 %v1509_v56 }
 0x410   : > { %v1763_v26 = vpop.permute.xlu0 %1762 }
 0x411   : > { %1518 = vmatpush.bf16.msrb.mxu3 %v3743_v1  ;;  %v1439_v1 = vmul.f32 %v3084_v33, %v3806_v48 }
 0x413   : > { %1956 = vadd.xlane.f32.xlu2 %v1955_v10  ;;  %v1445_v16 = vpack.c.bf16 %v1439_v1, %v1439_v1 }
 0x414   : > { %v1765_v43 = vpop.permute.xlu1 %1764 }
 0x415   : > { %v1454_v19 = vunpack.c.l.b16 %v1445_v16  ;;  %v1774_v55 = vsel %vm1227_vm7, %v1765_v43, 0 }
 0x417   : > { %v1456_v44 = vpack.c.b16 %v1454_v19, %v1454_v19 }
 0x41c   : > { %2843 = vmatmul.msk.bf16.gmra.mxu3 %vm1135_vm9, %v1256_v61 }
 0x41e   : > { %1959 = vadd.xlane.f32.xlu0 %v1958_v21 }
 0x42c   : > { %2849 = vmatmul.msk.bf16.vlgmr.msra.gmra.mxu3 %vm1135_vm9, %v1456_v44 }
 0x42d   : > { %1782 = vmatpush.bf16.msra.mxu3 %v1774_v55  ;;  %v1424_v42 = vpop.xlane.xlu2 %1423 }
 0x431   : > { %1783 = vmatpush.bf16.msra.mxu3 %v1763_v26 }
 0x435   : > { %v1680_v32 = vpop.xlane.xlu2 %1679 }
 0x436   : > { %3085 = vrcp.f32 %v1680_v32 }
 0x437   : > { %3087 = vrcp.f32 %v1424_v42 }
 0x43b   : > { %v1683_v22 = vpop.xlane.xlu0 %1682 }
 0x43c   : > { %v3086_v51 = vpop.eup %3085  ;;  %3089 = vrcp.f32 %v1683_v22 }
 0x43d   : > { %v1689_v48 = vpop.xlane.xlu2 %1688  ;;  %v3088_v34 = vpop.eup %3087  ;;  %v1702_v37 = vmul.f32 %v3086_v51, %v3829_v2 }
 0x43e   : > { %v1440_v41 = vmul.f32 %v3088_v34, %v3822_v52 }
 0x43f   : > { %v1427_v40 = vpop.xlane.xlu1 %1426  ;;  %v1708_v49 = vpack.c.bf16 %v1702_v37, %v1702_v37 }
 0x440   : > { %3091 = vrcp.f32 %v1427_v40  ;;  %v1446_v45 = vpack.c.bf16 %v1440_v41, %v1440_v41 }
 0x441   : > { %v1717_v38 = vunpack.c.l.b16 %v1708_v49 }
 0x442   : > { %v3090_v35 = vpop.eup %3089  ;;  %v1492_v20 = vunpack.c.l.b16 %v1446_v45 }
 0x443   : > { %v1703_v31 = vmul.f32 %v3090_v35, %v3836_v8  ;;  %v1430_v36 = vpop.xlane.xlu0 %1429 }
 0x444   : > { %3093 = vrcp.f32 %v1430_v36 }
 0x445   : > { %v1709_v5 = vpack.c.bf16 %v1703_v31, %v1703_v31  ;;  %v1695_v53 = vpop.xlane.xlu2 %1694 }
 0x446   : > { %v3092_v39 = vpop.eup %3091 }
 0x447   : > { %v1718_v11 = vunpack.c.l.b16 %v1709_v5  ;;  %v1441_v3 = vmul.f32 %v3092_v39, %v3843_v18  ;;  %v1686_v62 = vpop.xlane.xlu1 %1685 }
 0x448   : > { %3095 = vrcp.f32 %v1686_v62 }
 0x449   : > { %v1720_v2 = vpack.c.b16 %v1718_v11, %v1717_v38  ;;  %v1447_v59 = vpack.c.bf16 %v1441_v3, %v1441_v3 }
 0x44a   : > { %v3094_v52 = vpop.eup %3093 }
 0x44b   : > { %v1493_v6 = vunpack.c.l.b16 %v1447_v59  ;;  %2856 = vmatmul.msk.bf16.vlgmr.msra.gmra.mxu0 %vm1135_vm9, %v1720_v2  ;;  %v1442_v27 = vmul.f32 %v3094_v52, %v3850_v30  ;;  %v1948_v29 = vpop.xlane.xlu0 %1947 }
 0x44d   : > { %v1495_v8 = vpack.c.b16 %v1493_v6, %v1492_v20  ;;  %v1988_v47 = vpop.permute.xlu2 %1987  ;;  %v1448_v14 = vpack.c.bf16 %v1442_v27, %v1442_v27 }
 0x44e   : > { %v3096_v7 = vpop.eup %3095  ;;  %2008 = vmatpush.bf16.msrb.mxu0 %v1988_v47 }
 0x44f   : > { %v1945_v54 = vpop.xlane.xlu1 %1944  ;;  %2850 = vmatmul.msk.bf16.vlgmr.msrb.gmra.mxu3 %vm1135_vm9, %v1495_v8  ;;  %v1704_v63 = vmul.f32 %v3096_v7, %v3857_v50  ;;  %v1494_v46 = vunpack.c.l.b16 %v1448_v14 }
 0x450   : > { %3097 = vrcp.f32 %v1945_v54 }
 0x451   : > { %v1710_v18 = vpack.c.bf16 %v1704_v63, %v1704_v63  ;;  %3099 = vrcp.f32 %v1948_v29  ;;  %v1496_v50 = vpack.c.b16 %v1494_v46, %v1494_v46 }
 0x453   : > { %v1719_v56 = vunpack.c.l.b16 %v1710_v18  ;;  %v1951_v1 = vpop.xlane.xlu0 %1950 }
 0x455   : > { %v1721_v9 = vpack.c.b16 %v1719_v56, %v1719_v56 }
 0x456   : > { %v3098_v10 = vpop.eup %3097 }
 0x457   : > { %v1692_v0 = vpop.xlane.xlu1 %1691  ;;  %v3100_v17 = vpop.eup %3099  ;;  %v1967_v58 = vmul.f32 %v3098_v10, %v3870_v57 }
 0x458   : > { %3101 = vrcp.f32 %v1692_v0  ;;  %v1968_v30 = vmul.f32 %v3100_v17, %v3864_v28 }
 0x459   : > { %3103 = vrcp.f32 %v1689_v48  ;;  %v1973_v21 = vpack.c.bf16 %v1967_v58, %v1967_v58 }
 0x45a   : > { %v1974_v43 = vpack.c.bf16 %v1968_v30, %v1968_v30  ;;  %3105 = vrcp.f32 %v1951_v1 }
 0x45b   : > { %2857 = vmatmul.msk.bf16.gmra.mxu0 %vm1135_vm9, %v1721_v9  ;;  %v1982_v44 = vunpack.c.l.b16 %v1973_v21  ;;  %3107 = vrcp.f32 %v1695_v53 }
 0x45c   : > { %v1983_v26 = vunpack.c.l.b16 %v1974_v43 }
 0x45e   : > { %v3102_v61 = vpop.eup %3101  ;;  %v1985_v57 = vpack.c.b16 %v1983_v26, %v1982_v44 }
 0x45f   : > { %2851 = vmatmul.msk.bf16.gmra.mxu3 %vm1135_vm9, %v1496_v50  ;;  %v3104_v33 = vpop.eup %3103  ;;  %v1706_v16 = vmul.f32 %v3102_v61, %v3879_v23  ;;  %v1954_v23 = vpop.xlane.xlu1 %1953 }
 0x460   : > { %v1705_v19 = vmul.f32 %v3104_v33, %v3838_v13  ;;  %v3106_v22 = vpop.eup %3105  ;;  %3109 = vrcp.f32 %v1954_v23 }
 0x461   : > { %v1712_v55 = vpack.c.bf16 %v1706_v16, %v1706_v16  ;;  %v1969_v48 = vmul.f32 %v3106_v22, %v3875_v60  ;;  %v3108_v34 = vpop.eup %3107 }
 0x462   : > { %v1711_v42 = vpack.c.bf16 %v1705_v19, %v1705_v19  ;;  %v1707_v40 = vmul.f32 %v3108_v34, %v3852_v25 }
 0x463   : > { %v1758_v32 = vunpack.c.l.b16 %v1712_v55  ;;  %v1975_v13 = vpack.c.bf16 %v1969_v48, %v1969_v48 }
 0x464   : > { %v1757_v28 = vunpack.c.l.b16 %v1711_v42  ;;  %v1713_v41 = vpack.c.bf16 %v1707_v40, %v1707_v40  ;;  %v2937_v40 = vld [vmem:[%s3351_s15] sm:$0xff] }
 0x465   : > { %v1984_v35 = vunpack.c.l.b16 %v1975_v13 }
 0x466   : > { %v1760_v51 = vpack.c.b16 %v1758_v32, %v1757_v28  ;;  %v1759_v5 = vunpack.c.l.b16 %v1713_v41  ;;  %v2028_v53 = vpop.permute.xlu0 %2027  ;;  %v3110_v11 = vpop.eup %3109 }
 0x467   : > { %v1986_v60 = vpack.c.b16 %v1984_v35, %v1984_v35  ;;  %v1970_v2 = vmul.f32 %v3110_v11, %v3885_v4 }
 0x468   : > { %v1761_v39 = vpack.c.b16 %v1759_v5, %v1759_v5 }
 0x469   : > { %v1976_v20 = vpack.c.bf16 %v1970_v2, %v1970_v2 }
 0x46b   : > { %2864 = vmatmul.msk.bf16.vlgmr.msrb.gmra.mxu0 %vm1135_vm9, %v1985_v57  ;;  %v2022_v7 = vunpack.c.l.b16 %v1976_v20 }
 0x46f   : > { %v1240_v37 = vpop.f32.mrf.mxu3  ;;  %2858 = vmatmul.msk.bf16.vlgmr.msra.gmra.mxu3 %vm1135_vm9, %v1760_v51 }
 0x470   : > { %1289 = vst.msk [vmem:[#allocation2] sm:$0xff] %vm1054_vm6, %v1240_v37  ;;  %v2938_v37 = vld [vmem:[%s3351_s15 + $0x8] sm:$0xff] }
 0x471   : > { %2130 = vmatpush.bf16.msra.mxu1 %v2938_v37 }
 0x475   : > { %2131 = vmatpush.bf16.msra.mxu1 %v2937_v40 }
 0x477   : > { %v1242_v49 = vpop.f32.mrf.mxu3  ;;  %v2030_v31 = vpop.permute.xlu1 %2029 }
 0x478   : > { %1290 = vst.msk [vmem:[#allocation2 + $0x8] sm:$0xff] %vm1054_vm6, %v1242_v49  ;;  %v2039_v36 = vsel %vm1227_vm7, %v2030_v31, 0 }
 0x479   : > { %2047 = vmatpush.bf16.msrb.mxu3 %v2039_v36 }
 0x47b   : > { %2865 = vmatmul.msk.bf16.gmra.mxu0 %vm1135_vm9, %v1986_v60 }
 0x47d   : > { %2048 = vmatpush.bf16.msrb.mxu3 %v2028_v53 }
 0x47f   : > { %v1245_v45 = vpop.f32.mrf.mxu3  ;;  %2859 = vmatmul.msk.bf16.gmra.mxu3 %vm1135_vm9, %v1761_v39 }
 0x480   : > { %1291 = vst.msk [vmem:[#allocation2 + $0x10] sm:$0xff] %vm1054_vm6, %v1245_v45 }
 0x481   : > { %v1480_v25 = vpop.f32.mrf.mxu0 }
 0x482   : > { %1535 = vrot.lane.b32.xlu1 %v1480_v25, %s3205_s23 }
 0x486   : > { %v1957_v38 = vpop.xlane.xlu2 %1956 }
 0x487   : > { %3111 = vrcp.f32 %v1957_v38  ;;  %v1247_v3 = vpop.f32.mrf.mxu3 }
 0x489   : > { %v1482_v62 = vpop.f32.mrf.mxu0 }
 0x48a   : > { %1537 = vrot.lane.b32.xlu1 %v1482_v62, %s3205_s23 }
 0x48d   : > { %v3112_v59 = vpop.eup %3111 }
 0x48e   : > { %v1971_v6 = vmul.f32 %v3112_v59, %v3913_v12 }
 0x48f   : > { %v1280_v52 = vpop.f32.mrf.mxu3 }
 0x490   : > { %v1977_v8 = vpack.c.bf16 %v1971_v6, %v1971_v6  ;;  %1292 = vst.msk [vmem:[#allocation2 + $0x18] sm:$0xff] %vm1054_vm6, %v1280_v52 }
 0x491   : > { %v1960_v47 = vpop.xlane.xlu0 %1959 }
 0x492   : > { %v2023_v54 = vunpack.c.l.b16 %v1977_v8  ;;  %3113 = vrcp.f32 %v1960_v47  ;;  %v3000_v47 = vld [vmem:[%s4255_s18] ss:$0 sm:$0xff] }
 0x494   : > { %v2025_v63 = vpack.c.b16 %v2023_v54, %v2022_v7  ;;  %v3127_v54 = vld [vmem:[%s4228_s17] sm:$0xff] }
 0x496   : > { %2866 = vmatmul.msk.bf16.vlgmr.msrb.gmra.mxu3 %vm1135_vm9, %v2025_v63 }
 0x497   : > { %v1282_v18 = vpop.f32.mrf.mxu3 }
 0x498   : > { %v3114_v27 = vpop.eup %3113  ;;  %1293 = vst.msk [vmem:[#allocation2 + $0x20] sm:$0xff] %vm1054_vm6, %v1282_v18 }
 0x499   : > { %v1972_v4 = vmul.f32 %v3114_v27, %v3918_v15 }
 0x49b   : > { %v1978_v29 = vpack.c.bf16 %v1972_v4, %v1972_v4 }
 0x49d   : > { %v2024_v12 = vunpack.c.l.b16 %v1978_v29  ;;  %v3128_v29 = vld [vmem:[%s4228_s17 + $0x8] sm:$0xff] }
 0x49f   : > { %v1285_v56 = vpop.f32.mrf.mxu3  ;;  %v2026_v14 = vpack.c.b16 %v2024_v12, %v2024_v12 }
 0x4a0   : > { %1294 = vst.msk [vmem:[#allocation2 + $0x28] sm:$0xff] %vm1054_vm6, %v1285_v56 }
 0x4a6   : > { %2867 = vmatmul.msk.bf16.gmra.mxu3 %vm1135_vm9, %v2026_v14 }
 0x4a7   : > { %v1287_v0 = vpop.f32.mrf.mxu3 }
 0x4af   : > { %v1485_v9 = vpop.f32.mrf.mxu3 }
 0x4b7   : > { %v1487_v46 = vpop.f32.mrf.mxu3 }
 0x4c8   : > { %v1745_v10 = vpop.f32.mrf.mxu0 }
 0x4c9   : > { %1800 = vrot.lane.b32.xlu2 %v1745_v10, %s3206_s24 }
 0x4d0   : > { %v1747_v17 = vpop.f32.mrf.mxu0 }
 0x4d1   : > { %1539 = vrot.lane.b32.xlu2 %v1485_v9, %s3205_s23  ;;  %1802 = vrot.lane.b32.xlu1 %v1747_v17, %s3206_s24  ;;  %v3129_v9 = vld [vmem:[%s4228_s17 + $0x10] sm:$0xff] }
 0x4d2   : > { %v1520_v15 = vpop.f32.mrf.mxu3 }
 0x4d3   : > { %1541 = vrot.lane.b32.xlu0 %v1520_v15, %s3205_s23 }
 0x4d8   : > { %v1750_v58 = vpop.f32.mrf.mxu0 }
 0x4da   : > { %v1522_v50 = vpop.f32.mrf.mxu3 }
 0x4e0   : > { %v1752_v61 = vpop.f32.mrf.mxu0 }
 0x4e2   : > { %v1525_v30 = vpop.f32.mrf.mxu3 }
 0x4e8   : > { %v2010_v33 = vpop.f32.mrf.mxu0 }
 0x4e9   : > { %2065 = vrot.lane.b32.xlu1 %v2010_v33, %s3207_s30 }
 0x4ea   : > { %v1527_v21 = vpop.f32.mrf.mxu3 }
 0x4eb   : > { %v3131_v21 = vld [vmem:[%s4228_s17 + $0x20] sm:$0xff] }
 0x4f0   : > { %v2012_v1 = vpop.f32.mrf.mxu0 }
 0x4f1   : > { %2067 = vrot.lane.b32.xlu1 %v2012_v1, %s3207_s30 }
 0x4f2   : > { %v1785_v16 = vpop.f32.mrf.mxu3 }
 0x4f3   : > { %1806 = vrot.lane.b32.xlu2 %v1785_v16, %s3206_s24 }
 0x4f4   : > { %v1536_v19 = vpop.permute.xlu1 %1535 }
 0x4f5   : > { %1554 = vst.msk [vmem:[#allocation2] sm:$0xff] %vm1553_vm10, %v1536_v19 }
 0x4f8   : > { %v2015_v43 = vpop.f32.mrf.mxu0 }
 0x4f9   : > { %1804 = vrot.lane.b32.xlu1 %v1750_v58, %s3206_s24  ;;  %v3130_v58 = vld [vmem:[%s4228_s17 + $0x18] sm:$0xff] }
 0x4fa   : > { %v1787_v44 = vpop.f32.mrf.mxu3 }
 0x4fb   : > { %1808 = vrot.lane.b32.xlu0 %v1787_v44, %s3206_s24  ;;  %v3132_v44 = vld [vmem:[%s4228_s17 + $0x28] sm:$0xff] }
 0x4fc   : > { %v1538_v55 = vpop.permute.xlu1 %1537 }
 0x4fd   : > { %1555 = vst.msk [vmem:[#allocation2 + $0x8] sm:$0xff] %vm1553_vm10, %v1538_v55 }
 0x500   : > { %v2017_v42 = vpop.f32.mrf.mxu0 }
 0x501   : > { %2069 = vrot.lane.b32.xlu1 %v2015_v43, %s3207_s30 }
 0x502   : > { %v1790_v26 = vpop.f32.mrf.mxu3 }
 0x509   : > { %1543 = vrot.lane.b32.xlu1 %v1522_v50, %s3205_s23 }
 0x50a   : > { %v1792_v57 = vpop.f32.mrf.mxu3 }
 0x511   : > { %1810 = vrot.lane.b32.xlu1 %v1790_v26, %s3206_s24 }
 0x519   : > { %v2050_v32 = vpop.f32.mrf.mxu3 }
 0x51a   : > { %2071 = vrot.lane.b32.xlu2 %v2050_v32, %s3207_s30 }
 0x521   : > { %v2052_v22 = vpop.f32.mrf.mxu3 }
 0x522   : > { %1545 = vrot.lane.b32.xlu2 %v1525_v30, %s3205_s23 }
 0x523   : > { %v1801_v28 = vpop.permute.xlu2 %1800 }
 0x524   : > { %1819 = vst.msk [vmem:[#allocation2] sm:$0xff] %vm1818_vm11, %v1801_v28 }
 0x529   : > { %v2055_v51 = vpop.f32.mrf.mxu3 }
 0x52a   : > { %2073 = vrot.lane.b32.xlu2 %v2052_v22, %s3207_s30  ;;  %2075 = vrot.lane.b32.xlu0 %v2055_v51, %s3207_s30  ;;  %s4260_s30 = sld [smem:[#allocation16_spill]] (!%p2909_p6) }
 0x52b   : > { %v1540_v48 = vpop.permute.xlu2 %1539 }
 0x52c   : > { %1556 = vst.msk [vmem:[#allocation2 + $0x10] sm:$0xff] %vm1553_vm10, %v1540_v48 }
 0x531   : > { %v2057_v34 = vpop.f32.mrf.mxu3 }
 0x543   : > { %v1803_v23 = vpop.permute.xlu1 %1802 }
 0x544   : > { %1820 = vst.msk [vmem:[#allocation2 + $0x8] sm:$0xff] %vm1818_vm11, %v1803_v23 }
 0x545   : > { %v1542_v13 = vpop.permute.xlu0 %1541 }
 0x546   : > { %1557 = vst.msk [vmem:[#allocation2 + $0x18] sm:$0xff] %vm1553_vm10, %v1542_v13 }
 0x54d   : > { %v1807_v35 = vpop.permute.xlu2 %1806 }
 0x54e   : > { %1822 = vst.msk [vmem:[#allocation2 + $0x18] sm:$0xff] %vm1818_vm11, %v1807_v35 }
 0x55b   : > { %v2066_v41 = vpop.permute.xlu1 %2065 }
 0x55c   : > { %2084 = vst.msk [vmem:[#allocation2] sm:$0xff] %vm2083_vm12, %v2066_v41 }
 0x563   : > { %v2068_v49 = vpop.permute.xlu1 %2067  ;;  %v2090_v36 = vld [vmem:[#allocation2] sm:$0xff] }
 0x564   : > { %2085 = vst.msk [vmem:[#allocation2 + $0x8] sm:$0xff] %vm2083_vm12, %v2068_v49 }
 0x56b   : > { %v1805_v31 = vpop.permute.xlu1 %1804  ;;  %v2091_v60 = vld [vmem:[#allocation2 + $0x8] sm:$0xff] }
 0x56c   : > { %1821 = vst.msk [vmem:[#allocation2 + $0x10] sm:$0xff] %vm1818_vm11, %v1805_v31  ;;  %v2096_v5 = vpack.c.bf16 %v2091_v60, %v2090_v36 }
 0x56d   : > { %v1809_v25 = vpop.permute.xlu0 %1808 }
 0x56e   : > { %2876 = vmatmul.msk.bf16.vlgmr.msra.gmra.mxu1 %vm819_vm1, %v2096_v5 }
 0x573   : > { %v2070_v53 = vpop.permute.xlu1 %2069 }
 0x574   : > { %2086 = vst.msk [vmem:[#allocation2 + $0x10] sm:$0xff] %vm2083_vm12, %v2070_v53  ;;  %v2072_v39 = vpop.permute.xlu2 %2071 }
 0x575   : > { %2087 = vst.msk [vmem:[#allocation2 + $0x18] sm:$0xff] %vm2083_vm12, %v2072_v39 }
 0x57b   : > { %v1544_v45 = vpop.permute.xlu1 %1543  ;;  %v2092_v11 = vld [vmem:[#allocation2 + $0x10] sm:$0xff] }
 0x57c   : > { %1558 = vst.msk [vmem:[#allocation2 + $0x20] sm:$0xff] %vm1553_vm10, %v1544_v45  ;;  %v1546_v38 = vpop.permute.xlu2 %1545  ;;  %v2093_v3 = vld [vmem:[#allocation2 + $0x18] sm:$0xff] }
 0x57d   : > { %1823 = vst.msk [vmem:[#allocation2 + $0x20] sm:$0xff] %vm1818_vm11, %v1809_v25  ;;  %v2097_v62 = vpack.c.bf16 %v2093_v3, %v2092_v11 }
 0x57e   : > { %1559 = vst.msk [vmem:[#allocation2 + $0x28] sm:$0xff] %vm1553_vm10, %v1546_v38 }
 0x57f   : > { %2877 = vmatmul.msk.bf16.gmra.mxu1 %vm819_vm1, %v2097_v62 }
 0x583   : > { %v1811_v2 = vpop.permute.xlu1 %1810 }
 0x584   : > { %1824 = vst.msk [vmem:[#allocation2 + $0x28] sm:$0xff] %vm1818_vm11, %v1811_v2  ;;  %v2074_v59 = vpop.permute.xlu2 %2073 }
 0x585   : > { %2088 = vst.msk [vmem:[#allocation2 + $0x20] sm:$0xff] %vm2083_vm12, %v2074_v59 }
 0x58c   : > { %v2094_v6 = vld [vmem:[#allocation2 + $0x20] sm:$0xff] }
 0x59c   : > { %v2076_v20 = vpop.permute.xlu0 %2075 }
 0x59d   : > { %2089 = vst.msk [vmem:[#allocation2 + $0x28] sm:$0xff] %vm2083_vm12, %v2076_v20 }
 0x5a4   : > { %v2095_v52 = vld [vmem:[#allocation2 + $0x28] sm:$0xff] }
 0x5a5   : > { %v2098_v8 = vpack.c.bf16 %v2095_v52, %v2094_v6  ;;  %v2940_v52 = vld [vmem:[%s3368_s3 + $0x8] sm:$0xff] }
 0x5a6   : > { %2354 = vmatpush.bf16.msra.mxu2 %v2940_v52 }
 0x5a7   : > { %2878 = vmatmul.msk.bf16.gmra.mxu1 %vm819_vm1, %v2098_v8 }
 0x5eb   : > { %v2133_v7 = vpop.f32.mrf.mxu1 }
 0x5ec   : > { %v2148_v63 = vadd.f32 %v3127_v54, %v2133_v7  ;;  %v2939_v7 = vld [vmem:[%s3368_s3] sm:$0xff] }
 0x5ed   : > { %2355 = vmatpush.bf16.msra.mxu2 %v2939_v7 }
 0x5ee   : > { %v4007_v18 = vadd.f32 %v3000_v47, %v2148_v63 }
 0x5f0   : > { %v2166_v27 = vsel %vm819_vm1, %v4007_v18, 0.0 }
 0x5f1   : > { %2167 = vadd.xlane.f32.xlu1 %v2166_v27 }
 0x5f3   : > { %v2135_v4 = vpop.f32.mrf.mxu1 }
 0x5f4   : > { %v2149_v56 = vadd.f32 %v3128_v29, %v2135_v4 }
 0x5f6   : > { %v4014_v12 = vadd.f32 %v3000_v47, %v2149_v56 }
 0x5f8   : > { %v2169_v14 = vsel %vm819_vm1, %v4014_v12, 0.0 }
 0x5f9   : > { %2170 = vadd.xlane.f32.xlu2 %v2169_v14 }
 0x5fc   : > { %v2138_v0 = vpop.f32.mrf.mxu1 }
 0x5fd   : > { %v2150_v46 = vadd.f32 %v3129_v9, %v2138_v0 }
 0x5ff   : > { %v4021_v10 = vadd.f32 %v3000_v47, %v2150_v46 }
 0x601   : > { %v2172_v17 = vsel %vm819_vm1, %v4021_v10, 0.0 }
 0x602   : > { %2173 = vadd.xlane.f32.xlu0 %v2172_v17 }
 0x604   : > { %v2140_v15 = vpop.f32.mrf.mxu1 }
 0x605   : > { %v2151_v50 = vadd.f32 %v3130_v58, %v2140_v15 }
 0x607   : > { %v4028_v61 = vadd.f32 %v3000_v47, %v2151_v50 }
 0x609   : > { %v2175_v30 = vsel %vm819_vm1, %v4028_v61, 0.0 }
 0x60a   : > { %2176 = vadd.xlane.f32.xlu2 %v2175_v30 }
 0x624   : > { %v2143_v33 = vpop.f32.mrf.mxu1 }
 0x625   : > { %v2152_v1 = vadd.f32 %v3131_v21, %v2143_v33 }
 0x627   : > { %v4035_v16 = vadd.f32 %v3000_v47, %v2152_v1 }
 0x629   : > { %v2178_v19 = vsel %vm819_vm1, %v4035_v16, 0.0 }
 0x62a   : > { %2179 = vadd.xlane.f32.xlu1 %v2178_v19 }
 0x62c   : > { %v2145_v43 = vpop.f32.mrf.mxu1 }
 0x62d   : > { %v2153_v55 = vadd.f32 %v3132_v44, %v2145_v43 }
 0x62f   : > { %v4042_v42 = vadd.f32 %v3000_v47, %v2153_v55  ;;  %v4099_v55 = vld [vmem:[%s765_s25] ss:$0 sm:$0xff] }
 0x631   : > { %v2181_v26 = vsel %vm819_vm1, %v4042_v42, 0.0 }
 0x632   : > { %2182 = vadd.xlane.f32.xlu0 %v2181_v26 }
 0x664   : > { %v2168_v57 = vpop.xlane.xlu1 %2167 }
 0x665   : > { %v2184_v32 = vmul.f32 %v2168_v57, %v3445_v24 }
 0x667   : > { %v4048_v22 = vsub.f32 %v4007_v18, %v2184_v32 }
 0x669   : > { %v2196_v28 = vmul.f32 %v4048_v22, %v4048_v22 }
 0x66b   : > { %v2202_v51 = vsel %vm819_vm1, %v2196_v28, 0.0 }
 0x66c   : > { %v2171_v48 = vpop.xlane.xlu2 %2170  ;;  %2203 = vadd.xlane.f32.xlu2 %v2202_v51 }
 0x66d   : > { %v2185_v34 = vmul.f32 %v2171_v48, %v3445_v24 }
 0x66f   : > { %v4055_v23 = vsub.f32 %v4014_v12, %v2185_v34  ;;  %v4107_v34 = vld [vmem:[%s768_s28] ss:$0 sm:$0xff] }
 0x671   : > { %v2197_v37 = vmul.f32 %v4055_v23, %v4055_v23 }
 0x673   : > { %v2205_v13 = vsel %vm819_vm1, %v2197_v37, 0.0 }
 0x674   : > { %2206 = vadd.xlane.f32.xlu1 %v2205_v13 }
 0x675   : > { %v2174_v40 = vpop.xlane.xlu0 %2173 }
 0x676   : > { %v2186_v35 = vmul.f32 %v2174_v40, %v3445_v24 }
 0x678   : > { %v4062_v41 = vsub.f32 %v4021_v10, %v2186_v35 }
 0x67a   : > { %v2198_v49 = vmul.f32 %v4062_v41, %v4062_v41 }
 0x67c   : > { %v2208_v31 = vsel %vm819_vm1, %v2198_v49, 0.0 }
 0x67d   : > { %v2177_v36 = vpop.xlane.xlu2 %2176  ;;  %2209 = vadd.xlane.f32.xlu0 %v2208_v31 }
 0x67e   : > { %v2187_v60 = vmul.f32 %v2177_v36, %v3445_v24 }
 0x680   : > { %v4069_v5 = vsub.f32 %v4028_v61, %v2187_v60 }
 0x682   : > { %v2199_v53 = vmul.f32 %v4069_v5, %v4069_v5 }
 0x684   : > { %v2211_v39 = vsel %vm819_vm1, %v2199_v53, 0.0 }
 0x685   : > { %2212 = vadd.xlane.f32.xlu2 %v2211_v39 }
 0x69d   : > { %v2180_v45 = vpop.xlane.xlu1 %2179 }
 0x69e   : > { %v2188_v25 = vmul.f32 %v2180_v45, %v3445_v24 }
 0x6a0   : > { %v4076_v38 = vsub.f32 %v4035_v16, %v2188_v25 }
 0x6a2   : > { %v2200_v11 = vmul.f32 %v4076_v38, %v4076_v38 }
 0x6a4   : > { %v2214_v3 = vsel %vm819_vm1, %v2200_v11, 0.0 }
 0x6a5   : > { %2215 = vadd.xlane.f32.xlu1 %v2214_v3  ;;  %v2183_v62 = vpop.xlane.xlu0 %2182 }
 0x6a6   : > { %v2189_v2 = vmul.f32 %v2183_v62, %v3445_v24 }
 0x6a8   : > { %v4083_v59 = vsub.f32 %v4042_v42, %v2189_v2 }
 0x6aa   : > { %v2201_v20 = vmul.f32 %v4083_v59, %v4083_v59 }
 0x6ac   : > { %v2217_v6 = vsel %vm819_vm1, %v2201_v20, 0.0 }
 0x6ad   : > { %2218 = vadd.xlane.f32.xlu0 %v2217_v6 }
 0x6df   : > { %v2204_v8 = vpop.xlane.xlu2 %2203 }
 0x6e0   : > { %v2220_v47 = vmul.f32 %v2204_v8, %v3445_v24 }
 0x6e2   : > { %v2226_v54 = vadd.f32 1e-05, %v2220_v47 }
 0x6e4   : > { %3115 = vrsqrt.f32 %v2226_v54  ;;  %vm2238_vm14 = vweird.f32 %v2226_v54 }
 0x6e7   : > { %v2207_v63 = vpop.xlane.xlu1 %2206 }
 0x6e8   : > { %v2221_v27 = vmul.f32 %v2207_v63, %v3445_v24 }
 0x6ea   : > { %v3116_v4 = vpop.eup %3115  ;;  %v2227_v29 = vadd.f32 1e-05, %v2221_v27 }
 0x6eb   : > { %v2233_v56 = vmul.f32 %v3116_v4, %v2226_v54  ;;  %vm2239_vm13 = vweird.f32 %v3116_v4 }
 0x6ec   : > { %3117 = vrsqrt.f32 %v2227_v29  ;;  %vm2240_vm15 = vmor %vm2238_vm14, %vm2239_vm13  ;;  %vm2248_vm2 = vweird.f32 %v2227_v29 }
 0x6ed   : > { %v2234_v14 = vmul.f32 %v3116_v4, %v2233_v56 }
 0x6ef   : > { %v2235_v0 = vmul.f32 0.5, %v2234_v14 }
 0x6f0   : > { %v2210_v9 = vpop.xlane.xlu0 %2209 }
 0x6f1   : > { %v2236_v46 = vsub.f32 1.5, %v2235_v0  ;;  %v2222_v17 = vmul.f32 %v2210_v9, %v3445_v24 }
 0x6f2   : > { %v3118_v15 = vpop.eup %3117 }
 0x6f3   : > { %v2237_v58 = vmul.f32 %v3116_v4, %v2236_v46  ;;  %v2243_v50 = vmul.f32 %v3118_v15, %v2227_v29  ;;  %v2228_v30 = vadd.f32 1e-05, %v2222_v17  ;;  %vm2249_vm0 = vweird.f32 %v3118_v15 }
 0x6f4   : > { %vm2250_vm3 = vmor %vm2248_vm2, %vm2249_vm0  ;;  %vm2417_vm0 = vcmask 523264  }
 0x6f5   : > { %v2244_v33 = vmul.f32 %v3118_v15, %v2243_v50  ;;  %3119 = vrsqrt.f32 %v2228_v30  ;;  %v2241_v21 = vsel %vm2240_vm15, %v3116_v4, %v2237_v58  ;;  %vm2258_vm5 = vweird.f32 %v2228_v30 }
 0x6f6   : > { %v2292_v26 = vmul.f32 %v2241_v21, %v4048_v22 }
 0x6f7   : > { %v2245_v1 = vmul.f32 0.5, %v2244_v33 }
 0x6f8   : > { %v2213_v19 = vpop.xlane.xlu2 %2212  ;;  %v2301_v37 = vmul.f32 %v4099_v55, %v2292_v26 }
 0x6f9   : > { %v2246_v43 = vsub.f32 1.5, %v2245_v1  ;;  %v2223_v44 = vmul.f32 %v2213_v19, %v3445_v24 }
 0x6fa   : > { %v2310_v49 = vadd.f32 %v4107_v34, %v2301_v37  ;;  %v2941_v37 = vld [vmem:[%s3378_s2] sm:$0xff] }
 0x6fb   : > { %v3120_v57 = vpop.eup %3119  ;;  %v2247_v32 = vmul.f32 %v3118_v15, %v2246_v43  ;;  %v2229_v28 = vadd.f32 1e-05, %v2223_v44 }
 0x6fc   : > { %v2253_v51 = vmul.f32 %v3120_v57, %v2228_v30  ;;  %vm2259_vm4 = vweird.f32 %v3120_v57 }
 0x6fd   : > { %v2251_v48 = vsel %vm2250_vm3, %v3118_v15, %v2247_v32  ;;  %3121 = vrsqrt.f32 %v2229_v28  ;;  %vm2260_vm6 = vmor %vm2258_vm5, %vm2259_vm4  ;;  %vm2268_vm8 = vweird.f32 %v2229_v28 }
 0x6fe   : > { %v2293_v13 = vmul.f32 %v2251_v48, %v4055_v23  ;;  %v2254_v40 = vmul.f32 %v3120_v57, %v2253_v51  ;;  %v2943_v51 = vld [vmem:[%s3378_s2 + $0x10] sm:$0xff]  ;;  %v2942_v48 = vld [vmem:[%s3378_s2 + $0x8] sm:$0xff] }
 0x700   : > { %v2302_v22 = vmul.f32 %v4099_v55, %v2293_v13  ;;  %v2255_v35 = vmul.f32 0.5, %v2254_v40 }
 0x702   : > { %v2311_v31 = vadd.f32 %v4107_v34, %v2302_v22  ;;  %v2256_v36 = vsub.f32 1.5, %v2255_v35 }
 0x703   : > { %v3122_v60 = vpop.eup %3121 }
 0x704   : > { %v2257_v53 = vmul.f32 %v3120_v57, %v2256_v36  ;;  %v2263_v39 = vmul.f32 %v3122_v60, %v2229_v28  ;;  %v2316_v45 = vpack.c.bf16 %v2311_v31, %v2310_v49  ;;  %vm2269_vm7 = vweird.f32 %v3122_v60 }
 0x705   : > { %vm2270_vm9 = vmor %vm2268_vm8, %vm2269_vm7 }
 0x706   : > { %v2264_v25 = vmul.f32 %v3122_v60, %v2263_v39  ;;  %2887 = vmatmul.msk.bf16.vlgmr.msra.gmra.mxu2 %vm819_vm1, %v2316_v45  ;;  %v2261_v23 = vsel %vm2260_vm6, %v3120_v57, %v2257_v53 }
 0x707   : > { %v2294_v62 = vmul.f32 %v2261_v23, %v4062_v41 }
 0x708   : > { %v2265_v11 = vmul.f32 0.5, %v2264_v25 }
 0x709   : > { %v2303_v52 = vmul.f32 %v4099_v55, %v2294_v62 }
 0x70a   : > { %v2266_v3 = vsub.f32 1.5, %v2265_v11 }
 0x70b   : > { %v2312_v47 = vadd.f32 %v4107_v34, %v2303_v52  ;;  %v3004_v52 = vld [vmem:[%s4257_s29] ss:$0 sm:$0xff]  ;;  %s4258_s29 = sld [smem:[#allocation14_spill]] (!%p2909_p6) }
 0x70c   : > { %v2267_v2 = vmul.f32 %v3122_v60, %v2266_v3 }
 0x70e   : > { %v2271_v20 = vsel %vm2270_vm9, %v3122_v60, %v2267_v2 }
 0x70f   : > { %v2295_v6 = vmul.f32 %v2271_v20, %v4069_v5 }
 0x711   : > { %v2304_v8 = vmul.f32 %v4099_v55, %v2295_v6 }
 0x713   : > { %v2313_v7 = vadd.f32 %v4107_v34, %v2304_v8 }
 0x715   : > { %v2317_v54 = vpack.c.bf16 %v2313_v7, %v2312_v47 }
 0x717   : > { %2888 = vmatmul.msk.bf16.gmra.mxu2 %vm819_vm1, %v2317_v54 }
 0x718   : > { %v2216_v63 = vpop.xlane.xlu1 %2215 }
 0x719   : > { %v2224_v41 = vmul.f32 %v2216_v63, %v3445_v24 }
 0x71b   : > { %v2230_v27 = vadd.f32 1e-05, %v2224_v41 }
 0x71d   : > { %3123 = vrsqrt.f32 %v2230_v27  ;;  %vm2278_vm11 = vweird.f32 %v2230_v27 }
 0x720   : > { %v2219_v4 = vpop.xlane.xlu0 %2218 }
 0x721   : > { %v2225_v29 = vmul.f32 %v2219_v4, %v3445_v24 }
 0x723   : > { %v3124_v5 = vpop.eup %3123  ;;  %v2231_v56 = vadd.f32 1e-05, %v2225_v29 }
 0x724   : > { %v2273_v14 = vmul.f32 %v3124_v5, %v2230_v27  ;;  %vm2279_vm10 = vweird.f32 %v3124_v5 }
 0x725   : > { %3125 = vrsqrt.f32 %v2231_v56  ;;  %vm2280_vm12 = vmor %vm2278_vm11, %vm2279_vm10  ;;  %vm2288_vm14 = vweird.f32 %v2231_v56 }
 0x726   : > { %v2274_v0 = vmul.f32 %v3124_v5, %v2273_v14 }
 0x728   : > { %v2275_v9 = vmul.f32 0.5, %v2274_v0 }
 0x72a   : > { %v2276_v46 = vsub.f32 1.5, %v2275_v9 }
 0x72b   : > { %v3126_v17 = vpop.eup %3125 }
 0x72c   : > { %v2277_v15 = vmul.f32 %v3124_v5, %v2276_v46  ;;  %v2283_v58 = vmul.f32 %v3126_v17, %v2231_v56  ;;  %vm2289_vm13 = vweird.f32 %v3126_v17 }
 0x72d   : > { %vm2290_vm15 = vmor %vm2288_vm14, %vm2289_vm13 }
 0x72e   : > { %v2284_v50 = vmul.f32 %v3126_v17, %v2283_v58  ;;  %v2281_v30 = vsel %vm2280_vm12, %v3124_v5, %v2277_v15 }
 0x72f   : > { %v2296_v24 = vmul.f32 %v2281_v30, %v4076_v38  ;;  %v2944_v38 = vld [vmem:[%s3378_s2 + $0x18] sm:$0xff] }
 0x730   : > { %v2285_v33 = vmul.f32 0.5, %v2284_v50  ;;  %2431 = vmatpush.bf16.msra.mxu0 %v2944_v38 }
 0x731   : > { %v2305_v44 = vmul.f32 %v4099_v55, %v2296_v24 }
 0x732   : > { %v2286_v21 = vsub.f32 1.5, %v2285_v33 }
 0x733   : > { %v2314_v57 = vadd.f32 %v4107_v34, %v2305_v44 }
 0x734   : > { %v2287_v1 = vmul.f32 %v3126_v17, %v2286_v21  ;;  %2432 = vmatpush.bf16.msra.mxu0 %v2943_v51 }
 0x736   : > { %v2291_v19 = vsel %vm2290_vm15, %v3126_v17, %v2287_v1 }
 0x737   : > { %v2297_v43 = vmul.f32 %v2291_v19, %v4083_v59 }
 0x738   : > { %2433 = vmatpush.bf16.msra.mxu0 %v2942_v48 }
 0x739   : > { %v2306_v26 = vmul.f32 %v4099_v55, %v2297_v43  ;;  %v3003_v55 = vld [vmem:[%s4256_s20] ss:$0 sm:$0xff] }
 0x73b   : > { %v2315_v32 = vadd.f32 %v4107_v34, %v2306_v26 }
 0x73c   : > { %2434 = vmatpush.bf16.msra.mxu0 %v2941_v37 }
 0x73d   : > { %v2318_v28 = vpack.c.bf16 %v2315_v32, %v2314_v57 }
 0x73f   : > { %2889 = vmatmul.msk.bf16.gmra.mxu2 %vm819_vm1, %v2318_v28 }
 0x789   : > { %v2357_v59 = vpop.f32.mrf.mxu2 }
 0x78a   : > { %v2358_v13 = vadd.f32 %v3003_v55, %v2357_v59 }
 0x78c   : > { %v2372_v22 = vmax.f32 %v2358_v13, 0.0 }
 0x791   : > { %v2359_v40 = vpop.f32.mrf.mxu2 }
 0x792   : > { %v2360_v34 = vadd.f32 %v3003_v55, %v2359_v40 }
 0x794   : > { %v2373_v35 = vmax.f32 %v2360_v34, 0.0 }
 0x796   : > { %v2378_v49 = vpack.c.bf16 %v2373_v35, %v2372_v22 }
 0x798   : > { %2906 = vmatmul.msk.bf16.vlgmr.msra.gmra.mxu0 %vm2417_vm0, %v2378_v49 }
 0x79a   : > { %v2362_v31 = vpop.f32.mrf.mxu2 }
 0x79b   : > { %v2363_v36 = vadd.f32 %v3003_v55, %v2362_v31 }
 0x79d   : > { %v2374_v39 = vmax.f32 %v2363_v36, 0.0 }
 0x7a2   : > { %v2364_v60 = vpop.f32.mrf.mxu2 }
 0x7a3   : > { %v2365_v53 = vadd.f32 %v3003_v55, %v2364_v60 }
 0x7a5   : > { %v2375_v45 = vmax.f32 %v2365_v53, 0.0 }
 0x7a7   : > { %v2379_v25 = vpack.c.bf16 %v2375_v45, %v2374_v39 }
 0x7a9   : > { %2907 = vmatmul.msk.bf16.gmra.mxu0 %vm2417_vm0, %v2379_v25 }
 0x7c2   : > { %v2367_v23 = vpop.f32.mrf.mxu2 }
 0x7c3   : > { %v2368_v11 = vadd.f32 %v3003_v55, %v2367_v23 }
 0x7c5   : > { %v2376_v2 = vmax.f32 %v2368_v11, 0.0 }
 0x7ca   : > { %v2369_v3 = vpop.f32.mrf.mxu2 }
 0x7cb   : > { %v2370_v62 = vadd.f32 %v3003_v55, %v2369_v3 }
 0x7cd   : > { %v2377_v20 = vmax.f32 %v2370_v62, 0.0 }
 0x7cf   : > { %v2380_v6 = vpack.c.bf16 %v2377_v20, %v2376_v2 }
 0x7d1   : > { %2908 = vmatmul.msk.bf16.gmra.mxu0 %vm2417_vm0, %v2380_v6 }
 0x815   : > { %v2436_v8 = vpop.f32.mrf.mxu0 }
 0x816   : > { %v2437_v47 = vadd.f32 %v3004_v52, %v2436_v8 }
 0x818   : > { %v2451_v7 = vadd.f32 %v2437_v47, %v4007_v18 }
 0x81a   : > { %2457 = vst.msk [vmem:[%s4228_s17] sm:$0xff] %vm819_vm1, %v2451_v7 }
 0x81d   : > { %v2438_v54 = vpop.f32.mrf.mxu0 }
 0x81e   : > { %v2439_v63 = vadd.f32 %v3004_v52, %v2438_v54 }
 0x820   : > { %v2452_v41 = vadd.f32 %v2439_v63, %v4014_v12 }
 0x822   : > { %2458 = vst.msk [vmem:[%s4228_s17 + $0x8] sm:$0xff] %vm819_vm1, %v2452_v41 }
 0x826   : > { %v2441_v27 = vpop.f32.mrf.mxu0 }
 0x827   : > { %v2442_v4 = vadd.f32 %v3004_v52, %v2441_v27 }
 0x829   : > { %v2453_v29 = vadd.f32 %v2442_v4, %v4021_v10 }
 0x82b   : > { %2459 = vst.msk [vmem:[%s4228_s17 + $0x10] sm:$0xff] %vm819_vm1, %v2453_v29 }
 0x82e   : > { %v2443_v18 = vpop.f32.mrf.mxu0 }
 0x82f   : > { %v2444_v5 = vadd.f32 %v3004_v52, %v2443_v18 }
 0x831   : > { %v2454_v56 = vadd.f32 %v2444_v5, %v4028_v61 }
 0x833   : > { %2460 = vst.msk [vmem:[%s4228_s17 + $0x18] sm:$0xff] %vm819_vm1, %v2454_v56 }
 0x84e   : > { %v2446_v12 = vpop.f32.mrf.mxu0 }
 0x84f   : > { %v2447_v14 = vadd.f32 %v3004_v52, %v2446_v12 }
 0x851   : > { %v2455_v0 = vadd.f32 %v2447_v14, %v4035_v16 }
 0x853   : > { %2461 = vst.msk [vmem:[%s4228_s17 + $0x20] sm:$0xff] %vm819_vm1, %v2455_v0 }
 0x856   : > { %v2448_v10 = vpop.f32.mrf.mxu0 }
 0x857   : > { %v2449_v9 = vadd.f32 %v3004_v52, %v2448_v10  ;;  %2466 = sbr.rel (%p2909_p6) target bundleno = 2464 (0x9a0), region = 96 }
 0x859   : > { %v2456_v46 = vadd.f32 %v2449_v9, %v4042_v42 }
 0x85b   : > { %2462 = vst.msk [vmem:[%s4228_s17 + $0x28] sm:$0xff] %vm819_vm1, %v2456_v46 }
 0x85c   : > { %v2946_v61 = vld [vmem:[%s4224_s13 + $0x8] sm:$0xff]  ;;  %v2467_v16 = vpack.c.bf16 %v2451_v7, %v2451_v7  ;;  %v2468_v17 = vpack.c.bf16 %v2454_v56, %v2454_v56  ;;  %v2945_v15 = vld [vmem:[%s4224_s13] sm:$0xff]  ;;  %vm2482_vm2 = vcmask 1041409   ;;  %vm2570_vm6 = vcmask 130048  }
 0x85d   : > { %2506 = vmatpush.bf16.msra.mxu0 %v2946_v61  ;;  %v3133_v21 = vld [vmem:[%s4258_s29] ss:$0 sm:$0xff] }
 0x85e   : > { %v2479_v42 = vunpack.c.l.b16 %v2467_v16  ;;  %v2480_v58 = vunpack.c.l.b16 %v2468_v17  ;;  %v2947_v37 = vld [vmem:[%s4259_s21] sm:$0xff] }
 0x85f   : > { %2581 = vmatpush.bf16.msra.mxu1 %v2947_v37  ;;  %v3134_v29 = vld [vmem:[%s4260_s30] ss:$0 sm:$0xff] }
 0x860   : > { %v2481_v50 = vrot.slane %v2480_v58, 7 }
 0x861   : > { %2507 = vmatpush.bf16.msra.mxu0 %v2945_v15 }
 0x862   : > { %v2483_v30 = vsel %vm2482_vm2, %v2481_v50, %v2479_v42 }
 0x863   : > { %v2484_v33 = vpack.c.b16 %v2483_v30, %v2483_v30 }
 0x865   : > { %2918 = vmatmul.msk.bf16.vlgmr.msra.gmra.mxu0 %vm819_vm1, %v2484_v33 }
 0x8e2   : > { %v2509_v24 = vpop.f32.mrf.mxu0 }
 0x8e3   : > { %v2510_v1 = vadd.f32 %v3133_v21, %v2509_v24 }
 0x8e5   : > { %v2514_v19 = vmul.f32 0.70710677, %v2510_v1  ;;  %v2513_v63 = vmul.f32 0.5, %v2510_v1 }
 0x8e7   : > { %v2515_v43 = vmul.f32 %v2514_v19, %v2514_v19 }
 0x8e9   : > { %v2516_v44 = vmin.f32 %v2515_v43, 16.0 }
 0x8ea   : > { %v2511_v26 = vpop.f32.mrf.mxu0 }
 0x8eb   : > { %v2517_v57 = vmul.f32 2.1237322e-06, %v2516_v44  ;;  %v2528_v32 = vmul.f32 3.8918573e-05, %v2516_v44 }
 0x8ed   : > { %v2518_v28 = vadd.f32 0.00028619796, %v2517_v57  ;;  %v2529_v38 = vadd.f32 0.001143296, %v2528_v32 }
 0x8ef   : > { %v2519_v51 = vmul.f32 %v2518_v28, %v2516_v44  ;;  %v2530_v48 = vmul.f32 %v2529_v38, %v2516_v44 }
 0x8f1   : > { %v2531_v59 = vadd.f32 0.014752088, %v2530_v48  ;;  %v2520_v55 = vadd.f32 0.0036580483, %v2519_v51 }
 0x8f3   : > { %v2532_v13 = vmul.f32 %v2531_v59, %v2516_v44  ;;  %v2521_v34 = vmul.f32 %v2520_v55, %v2516_v44 }
 0x8f5   : > { %v2533_v40 = vadd.f32 0.112945676, %v2532_v13  ;;  %v2522_v49 = vadd.f32 0.05243302, %v2521_v34 }
 0x8f7   : > { %v2534_v22 = vmul.f32 %v2533_v40, %v2516_v44  ;;  %v2523_v60 = vmul.f32 %v2522_v49, %v2516_v44 }
 0x8f9   : > { %v2535_v35 = vadd.f32 0.4994258, %v2534_v22  ;;  %v2524_v53 = vadd.f32 0.18741608, %v2523_v60 }
 0x8fb   : > { %v2536_v31 = vmul.f32 %v2535_v35, %v2516_v44  ;;  %v2525_v45 = vmul.f32 %v2524_v53, %v2516_v44 }
 0x8fd   : > { %v2537_v36 = vadd.f32 1.0, %v2536_v31  ;;  %v2526_v3 = vadd.f32 1.1283791, %v2525_v45 }
 0x8ff   : > { %3135 = vrcp.f32 %v2537_v36  ;;  %v2549_v11 = vand.u32 2147483648, %v2537_v36  ;;  %v2547_v2 = vand.u32 2147483647, %v2537_v36  ;;  %vm2543_vm3 = vweird.f32 %v2537_v36 }
 0x900   : > { %v2527_v52 = vmul.f32 %v2526_v3, %v2514_v19 }
 0x901   : > { %v2550_v6 = vor.u32 1.1754944e-38, %v2549_v11  ;;  %vm2548_vm5 = vcmp.eq.f32.partialorder %v2547_v2, 8.507059e+37 }
 0x905   : > { %v3136_v39 = vpop.eup %3135 }
 0x906   : > { %v2539_v25 = vmul.f32 %v3136_v39, %v2537_v36  ;;  %vm2544_vm1 = vweird.f32 %v3136_v39 }
 0x907   : > { %vm2545_vm4 = vmor %vm2543_vm3, %vm2544_vm1 }
 0x908   : > { %v2540_v23 = vsub.f32 1.0, %v2539_v25 }
 0x90a   : > { %v2541_v62 = vmul.f32 %v3136_v39, %v2540_v23 }
 0x90c   : > { %v2542_v20 = vadd.f32 %v3136_v39, %v2541_v62 }
 0x90e   : > { %v2546_v8 = vsel %vm2545_vm4, %v3136_v39, %v2542_v20 }
 0x90f   : > { %v2551_v47 = vsel %vm2548_vm5, %v2550_v6, %v2546_v8 }
 0x910   : > { %v2552_v7 = vmul.f32 %v2551_v47, %v2527_v52 }
 0x912   : > { %v2919_v54 = vclamps-f32 %v2552_v7, 1.0 }
 0x914   : > { %v2555_v41 = vadd.f32 1.0, %v2919_v54 }
 0x916   : > { %v2556_v27 = vmul.f32 %v2555_v41, %v2513_v63 }
 0x918   : > { %v2557_v4 = vpack.c.bf16 %v2556_v27, %v2556_v27 }
 0x91a   : > { %2924 = vmatmul.msk.bf16.vlgmr.msra.gmra.mxu1 %vm2570_vm6, %v2557_v4 }
 0x997   : > { %v2583_v18 = vpop.f32.mrf.mxu1 }
 0x998   : > { %v2584_v5 = vadd.f32 %v3134_v29, %v2583_v18 }
 0x99a   : > { %v2588_v56 = vrot.slane %v2584_v5, 1  ;;  %2590 = vst [vmem:[#allocation3] sm:$0x1] %v2584_v5 }
 0x99c   : > { %2591 = vst [vmem:[#allocation3 + $0x1] sm:$0x1] %v2588_v56 }
 0x99f   : > { %v2585_v12 = vpop.f32.mrf.mxu1 }
 0x9a0 PF: > { %s4261_s15 = sld [smem:[#allocation7_spill]]  ;;  %s3208_s28 = smov [#allocation3]  }
 0x9a1   : > { %s4263_s5 = sld [smem:[#allocation17_spill]]  ;;  %s2609_s25 = sshll.u32 %s3208_s28, 4  ;;  %s2610_s25 = int_to_ptr.vmem [resolvable:$true] %s2609_s25 }
 0x9a2   : > { %s3209_s20 = smov 1  }
 0x9a6   : > { %s4262_s0 = sadd.s32 4294967295, %s4261_s15  }
 0x9a7   : > { %p2954_p7 = scmp.eq.s32.totalorder %s4262_s0, 1  ;;  %s2611_s26 = sshll.u32 %s4263_s5, 4  ;;  %s2612_s26 = int_to_ptr.hbm [resolvable:$true] %s2611_s26 }
 0x9a9   : > { %2951 = dma.vmem_to_hbm [thread:$0]  (%p2954_p7), %s2610_s25, 32, %s2612_s26, [#allocation4], %s3206_s24, %s3206_s24, %s3209_s20  }
 0x9aa   : > { %3178 = dma.done.wait (%p2954_p7), [#allocation4], 32  }
 0x9ab   : > { %3180 = vsyncadd (%p2954_p7), [#allocation4], 4294967264 }
 0x9ac PF: > { %s4264_s2 = sld [smem:[#allocation7_spill]] }
 0x9ad   : > { %s4265_s27 = sld [smem:[#allocation6_spill]] }
 0x9ae   : > { %s4266_s28 = sld [smem:[#allocation8_spill]] }
 0x9b2   : > { %s30_s29 = sadd.s32 1, %s4264_s2  }
 0x9b3   : > { %p27_p8 = scmp.ge.s32.totalorder %s30_s29, 4  }
 0x9b5   :  { %29 = sbr.rel (!%p27_p8) target bundleno = 12 (0xc), region = 172 }
 0x9ba   :  { %2637 = vsyncpa [#allocation4], 1 }
 0x9bb   :  { %2639 = vsyncpa [#allocation4 + $0x1], 1 }

</bundles_post_ra>
